<compile_context>
chip_gen: v5e
topology: v5e:2x2
jax: 0.10.0
libtpu: 0.0.40
codegen_flags: <defaults>
</compile_context>

<pallas_src>
import functools

import jax
import jax.numpy as jnp
from jax.experimental import pallas as pl
from jax.experimental.pallas import tpu as pltpu


# Padded (lane-dense) dims.
D_IN = 28 * 28          # 784
D_IN_PAD = 896          # 7 * 128
D_H1 = 196
D_H1_PAD = 256          # 2 * 128
D_H2 = 48
D_HEAD = 16
D_Z = 2


def _round_up(n, m):
    return ((n + m - 1) // m) * m


# ----------------------------------------------------------------------------
# Pallas kernel: full VAE forward (encode -> sample -> decode) for one batch tile
# ----------------------------------------------------------------------------
def vae_kernel(
    x_ref, eps_ref,
    # encoder: [896,256], [1,256], [256,48], [1,48]
    wc0, bc0, wc1, bc1,
    # fused mean/log_var heads: [48,32], [1,32], [32,4], [1,4]
    wmv0, bmv0, wmv1, bmv1,
    # decoder: [2,16], [1,16], [16,48], [1,48], [48,256], [1,256], [256,896], [1,896]
    wd0, bd0, wd1, bd1, wd2, bd2, wd3, bd3,
    # outputs
    mv_ref,    # [TB, 4]  = (mean | log_var)
    out_ref,   # [TB, 896] (cols 784:896 are zero)
):
    def linear(h, w_ref, b_ref):
        # bf16 MXU operands, f32 accumulation, f32 bias add.
        return (
            jnp.dot(h.astype(jnp.bfloat16), w_ref[...],
                    preferred_element_type=jnp.float32)
            + b_ref[...]
        )

    x = x_ref[...]                                   # [TB, 896] f32

    # ---- encode ----
    h = jnp.tanh(linear(x, wc0, bc0))                # [TB, 256] (196 live)
    h = jnp.tanh(linear(h, wc1, bc1))                # [TB, 48]

    # ---- fused mean / log_var heads ----
    hm = jnp.tanh(linear(h, wmv0, bmv0))             # [TB, 32]
    mv = linear(hm, wmv1, bmv1)                      # [TB, 4]  (mean | log_var)

    mean = mv[:, 0:2]
    log_var = mv[:, 2:4]

    # ---- sample (reparameterization) ----
    std = jnp.exp(0.5 * log_var)
    z = eps_ref[...] * std + mean                    # [TB, 2]

    # ---- decode ----
    d = jnp.tanh(linear(z, wd0, bd0))                # [TB, 16]
    d = jnp.tanh(linear(d, wd1, bd1))                # [TB, 48]
    d = jnp.tanh(linear(d, wd2, bd2))                # [TB, 256] (196 live)
    out = linear(d, wd3, bd3)                        # [TB, 896] (784 live)

    mv_ref[...] = mv
    out_ref[...] = out


# ----------------------------------------------------------------------------
# Parameter prep: pad to lane-dense widths, fuse heads, cast weights to bf16
# ----------------------------------------------------------------------------
def prepare_params(params):
    """params: list of 10 (w [in,out] f32, b [1,out] f32) matching the module."""
    (wc0, bc0), (wc1, bc1), (wm0, bm0), (wm1, bm1), \
        (wv0, bv0), (wv1, bv1), (wd0, bd0), (wd1, bd1), \
        (wd2, bd2), (wd3, bd3) = params

    def pad2(a, rows, cols):
        return jnp.pad(a, ((0, rows - a.shape[0]), (0, cols - a.shape[1])))

    # Encoder: pad 784->896 (rows) and 196->256 (cols / rows). Padded rows of
    # the *next* layer's weight are zero, so zero-padded activations are inert.
    wc0_p = pad2(wc0, D_IN_PAD, D_H1_PAD)
    bc0_p = pad2(bc0, 1, D_H1_PAD)
    wc1_p = pad2(wc1, D_H1_PAD, D_H2)

    # Fused mean/log_var heads.
    wmv0 = jnp.concatenate([wm0, wv0], axis=1)                      # [48, 32]
    bmv0 = jnp.concatenate([bm0, bv0], axis=1)                      # [1, 32]
    zeros = jnp.zeros((D_HEAD, D_Z), jnp.float32)
    wmv1 = jnp.concatenate(
        [jnp.concatenate([wm1, zeros], axis=1),
         jnp.concatenate([zeros, wv1], axis=1)], axis=0)            # [32, 4]
    bmv1 = jnp.concatenate([bm1, bv1], axis=1)                      # [1, 4]

    # Decoder: pad 196->256 and 784->896.
    wd2_p = pad2(wd2, D_H2, D_H1_PAD)
    bd2_p = pad2(bd2, 1, D_H1_PAD)
    wd3_p = pad2(wd3, D_H1_PAD, D_IN_PAD)
    bd3_p = pad2(bd3, 1, D_IN_PAD)

    weights = [wc0_p, wc1_p, wmv0, wmv1, wd0, wd1, wd2_p, wd3_p]
    biases = [bc0_p, bc1, bmv0, bmv1, bd0, bd1, bd2_p, bd3_p]

    flat = []
    for w, b in zip(weights, biases):
        flat.append(w.astype(jnp.bfloat16))   # MXU operands
        flat.append(b.astype(jnp.float32))    # f32 bias add
    return flat


# ----------------------------------------------------------------------------
# Wrapper
# ----------------------------------------------------------------------------
@functools.partial(jax.jit, static_argnames=("tb",))
def vae_forward(x_nchw, eps, flat_params, *, tb=256):
    B = x_nchw.shape[0]
    x_flat = x_nchw.reshape(B, D_IN).astype(jnp.float32)   # torch.flatten(x, 1)
    x_pad = jnp.pad(x_flat, ((0, 0), (0, D_IN_PAD - D_IN)))
    eps = eps.astype(jnp.float32)

    # Batch tile: 256 rows (fills the 256-wide MXU on v6e/v7x; fine on v5e too);
    # small batches just round up to a sublane multiple and run one grid step.
    TB = tb if B >= tb else _round_up(B, 8)
    Bp = _round_up(B, TB)
    if Bp != B:
        x_pad = jnp.pad(x_pad, ((0, Bp - B), (0, 0)))
        eps = jnp.pad(eps, ((0, Bp - B), (0, 0)))
    grid = (Bp // TB,)

    # Weights/biases: full-array blocks, constant index map -> VMEM-resident
    # across all batch tiles. x/eps/outputs tiled along the batch axis.
    w_specs = [pl.BlockSpec(p.shape, lambda b: (0, 0)) for p in flat_params]
    in_specs = [
        pl.BlockSpec((TB, D_IN_PAD), lambda b: (b, 0)),
        pl.BlockSpec((TB, D_Z), lambda b: (b, 0)),
    ] + w_specs
    out_specs = (
        pl.BlockSpec((TB, 4), lambda b: (b, 0)),
        pl.BlockSpec((TB, D_IN_PAD), lambda b: (b, 0)),
    )

    mv, out_pad = pl.pallas_call(
        vae_kernel,
        out_shape=(
            jax.ShapeDtypeStruct((Bp, 4), jnp.float32),
            jax.ShapeDtypeStruct((Bp, D_IN_PAD), jnp.float32),
        ),
        grid=grid,
        in_specs=in_specs,
        out_specs=out_specs,
        compiler_params=pltpu.CompilerParams(
            dimension_semantics=("parallel",),
        ),
    )(x_pad, eps, *flat_params)

    mean = mv[:B, 0:2]
    log_var = mv[:B, 2:4]
    out = out_pad[:B, :D_IN].reshape(B, 1, 28, 28)
    return mean, log_var, out


# ----------------------------------------------------------------------------
# Deterministic parameter initialization (shapes from the PyTorch __init__)
# ----------------------------------------------------------------------------
def init_params(key):
    layer_dims = [
        (784, 196), (196, 48),                       # common_fc
        (48, 16), (16, 2),                           # mean_fc
        (48, 16), (16, 2),                           # log_var_fc
        (2, 16), (16, 48), (48, 196), (196, 784),    # decoder_fc
    ]
    params = []
    for (fan_in, fan_out) in layer_dims:
        key, kw, kb = jax.random.split(key, 3)
        bound = 1.0 / jnp.sqrt(fan_in)
        w = jax.random.uniform(kw, (fan_in, fan_out), jnp.float32, -bound, bound)
        b = jax.random.uniform(kb, (1, fan_out), jnp.float32, -bound, bound)
        params.append((w, b))
    return params


if __name__ == "__main__":
    key = jax.random.PRNGKey(0)
    k_params, k_x, k_eps = jax.random.split(key, 3)

    params = init_params(k_params)
    flat_params = prepare_params(params)

    B = 2
    x = jax.random.normal(k_x, (B, 1, 28, 28), jnp.float32)
    # epsilon ~ N(0,1), same shape as mean/log_var (reparameterization noise)
    eps = jax.random.normal(k_eps, (B, 2), jnp.float32)

    mean, log_var, out = vae_forward(x, eps, flat_params, tb=256)
    jax.block_until_ready((mean, log_var, out))

    assert mean.shape == (B, 2)
    assert log_var.shape == (B, 2)
    assert out.shape == (B, 1, 28, 28)
    print("KERNEL_OK")
</pallas_src>

<mosaic_0001>
module attributes {stable_mosaic.version = 11 : i64} {
  func.func @vae_kernel(%arg0: i32, %arg1: memref<8x896xf32, #tpu.memory_space<vmem>>, %arg2: memref<8x2xf32, #tpu.memory_space<vmem>>, %arg3: memref<896x256xbf16, #tpu.memory_space<vmem>>, %arg4: memref<1x256xf32, #tpu.memory_space<vmem>>, %arg5: memref<256x48xbf16, #tpu.memory_space<vmem>>, %arg6: memref<1x48xf32, #tpu.memory_space<vmem>>, %arg7: memref<48x32xbf16, #tpu.memory_space<vmem>>, %arg8: memref<1x32xf32, #tpu.memory_space<vmem>>, %arg9: memref<32x4xbf16, #tpu.memory_space<vmem>>, %arg10: memref<1x4xf32, #tpu.memory_space<vmem>>, %arg11: memref<2x16xbf16, #tpu.memory_space<vmem>>, %arg12: memref<1x16xf32, #tpu.memory_space<vmem>>, %arg13: memref<16x48xbf16, #tpu.memory_space<vmem>>, %arg14: memref<1x48xf32, #tpu.memory_space<vmem>>, %arg15: memref<48x256xbf16, #tpu.memory_space<vmem>>, %arg16: memref<1x256xf32, #tpu.memory_space<vmem>>, %arg17: memref<256x896xbf16, #tpu.memory_space<vmem>>, %arg18: memref<1x896xf32, #tpu.memory_space<vmem>>, %arg19: memref<8x4xf32, #tpu.memory_space<vmem>>, %arg20: memref<8x896xf32, #tpu.memory_space<vmem>>) attributes {dimension_semantics = [#tpu.dimension_semantics<parallel>], iteration_bounds = array<i64: 1>, scalar_prefetch = 0 : i64, scratch_operands = 0 : i64, tpu.core_type = #tpu.core_type<tc>, window_params = [{transform_indices = @transform_0, window_bounds = array<i64: 8, 896>}, {transform_indices = @transform_1, window_bounds = array<i64: 8, 2>}, {pipeline_mode = #tpu.pipeline_mode<synchronous>, transform_indices = @transform_2, window_bounds = array<i64: 896, 256>}, {pipeline_mode = #tpu.pipeline_mode<synchronous>, transform_indices = @transform_3, window_bounds = array<i64: 1, 256>}, {pipeline_mode = #tpu.pipeline_mode<synchronous>, transform_indices = @transform_4, window_bounds = array<i64: 256, 48>}, {pipeline_mode = #tpu.pipeline_mode<synchronous>, transform_indices = @transform_5, window_bounds = array<i64: 1, 48>}, {pipeline_mode = #tpu.pipeline_mode<synchronous>, transform_indices = @transform_6, window_bounds = array<i64: 48, 32>}, {pipeline_mode = #tpu.pipeline_mode<synchronous>, transform_indices = @transform_7, window_bounds = array<i64: 1, 32>}, {pipeline_mode = #tpu.pipeline_mode<synchronous>, transform_indices = @transform_8, window_bounds = array<i64: 32, 4>}, {pipeline_mode = #tpu.pipeline_mode<synchronous>, transform_indices = @transform_9, window_bounds = array<i64: 1, 4>}, {pipeline_mode = #tpu.pipeline_mode<synchronous>, transform_indices = @transform_10, window_bounds = array<i64: 2, 16>}, {pipeline_mode = #tpu.pipeline_mode<synchronous>, transform_indices = @transform_11, window_bounds = array<i64: 1, 16>}, {pipeline_mode = #tpu.pipeline_mode<synchronous>, transform_indices = @transform_12, window_bounds = array<i64: 16, 48>}, {pipeline_mode = #tpu.pipeline_mode<synchronous>, transform_indices = @transform_13, window_bounds = array<i64: 1, 48>}, {pipeline_mode = #tpu.pipeline_mode<synchronous>, transform_indices = @transform_14, window_bounds = array<i64: 48, 256>}, {pipeline_mode = #tpu.pipeline_mode<synchronous>, transform_indices = @transform_15, window_bounds = array<i64: 1, 256>}, {pipeline_mode = #tpu.pipeline_mode<synchronous>, transform_indices = @transform_16, window_bounds = array<i64: 256, 896>}, {pipeline_mode = #tpu.pipeline_mode<synchronous>, transform_indices = @transform_17, window_bounds = array<i64: 1, 896>}, {transform_indices = @transform_18, window_bounds = array<i64: 8, 4>}, {transform_indices = @transform_19, window_bounds = array<i64: 8, 896>}]} {
    %c0 = arith.constant 0 : index
    %c0_0 = arith.constant 0 : index
    %0 = vector.load %arg1[%c0, %c0_0] : memref<8x896xf32, #tpu.memory_space<vmem>>, vector<8x896xf32>
    %1 = arith.truncf %0 : vector<8x896xf32> to vector<8x896xbf16>
    %c0_1 = arith.constant 0 : index
    %c0_2 = arith.constant 0 : index
    %2 = vector.load %arg3[%c0_1, %c0_2] : memref<896x256xbf16, #tpu.memory_space<vmem>>, vector<896x256xbf16>
    %cst = arith.constant dense<0.000000e+00> : vector<8x256xf32>
    %3 = tpu.matmul %1, %2, %cst {dimension_numbers = #tpu.dot_dimension_numbers<[1], [0], [0], [1], [0, 0, 1, 1], [], []>} : vector<8x896xbf16>, vector<896x256xbf16>, vector<8x256xf32> -> vector<8x256xf32>
    %c0_3 = arith.constant 0 : index
    %c0_4 = arith.constant 0 : index
    %4 = vector.load %arg4[%c0_3, %c0_4] : memref<1x256xf32, #tpu.memory_space<vmem>>, vector<1x256xf32>
    %5 = vector.broadcast %4 : vector<1x256xf32> to vector<8x256xf32>
    %6 = arith.addf %3, %5 : vector<8x256xf32>
    %7 = math.tanh %6 : vector<8x256xf32>
    %8 = arith.truncf %7 : vector<8x256xf32> to vector<8x256xbf16>
    %c0_5 = arith.constant 0 : index
    %c0_6 = arith.constant 0 : index
    %9 = vector.load %arg5[%c0_5, %c0_6] : memref<256x48xbf16, #tpu.memory_space<vmem>>, vector<256x48xbf16>
    %cst_7 = arith.constant dense<0.000000e+00> : vector<8x48xf32>
    %10 = tpu.matmul %8, %9, %cst_7 {dimension_numbers = #tpu.dot_dimension_numbers<[1], [0], [0], [1], [0, 0, 1, 1], [], []>} : vector<8x256xbf16>, vector<256x48xbf16>, vector<8x48xf32> -> vector<8x48xf32>
    %c0_8 = arith.constant 0 : index
    %c0_9 = arith.constant 0 : index
    %11 = vector.load %arg6[%c0_8, %c0_9] : memref<1x48xf32, #tpu.memory_space<vmem>>, vector<1x48xf32>
    %12 = vector.broadcast %11 : vector<1x48xf32> to vector<8x48xf32>
    %13 = arith.addf %10, %12 : vector<8x48xf32>
    %14 = math.tanh %13 : vector<8x48xf32>
    %15 = arith.truncf %14 : vector<8x48xf32> to vector<8x48xbf16>
    %c0_10 = arith.constant 0 : index
    %c0_11 = arith.constant 0 : index
    %16 = vector.load %arg7[%c0_10, %c0_11] : memref<48x32xbf16, #tpu.memory_space<vmem>>, vector<48x32xbf16>
    %cst_12 = arith.constant dense<0.000000e+00> : vector<8x32xf32>
    %17 = tpu.matmul %15, %16, %cst_12 {dimension_numbers = #tpu.dot_dimension_numbers<[1], [0], [0], [1], [0, 0, 1, 1], [], []>} : vector<8x48xbf16>, vector<48x32xbf16>, vector<8x32xf32> -> vector<8x32xf32>
    %c0_13 = arith.constant 0 : index
    %c0_14 = arith.constant 0 : index
    %18 = vector.load %arg8[%c0_13, %c0_14] : memref<1x32xf32, #tpu.memory_space<vmem>>, vector<1x32xf32>
    %19 = vector.broadcast %18 : vector<1x32xf32> to vector<8x32xf32>
    %20 = arith.addf %17, %19 : vector<8x32xf32>
    %21 = math.tanh %20 : vector<8x32xf32>
    %22 = arith.truncf %21 : vector<8x32xf32> to vector<8x32xbf16>
    %c0_15 = arith.constant 0 : index
    %c0_16 = arith.constant 0 : index
    %23 = vector.load %arg9[%c0_15, %c0_16] : memref<32x4xbf16, #tpu.memory_space<vmem>>, vector<32x4xbf16>
    %cst_17 = arith.constant dense<0.000000e+00> : vector<8x4xf32>
    %24 = tpu.matmul %22, %23, %cst_17 {dimension_numbers = #tpu.dot_dimension_numbers<[1], [0], [0], [1], [0, 0, 1, 1], [], []>} : vector<8x32xbf16>, vector<32x4xbf16>, vector<8x4xf32> -> vector<8x4xf32>
    %c0_18 = arith.constant 0 : index
    %c0_19 = arith.constant 0 : index
    %25 = vector.load %arg10[%c0_18, %c0_19] : memref<1x4xf32, #tpu.memory_space<vmem>>, vector<1x4xf32>
    %26 = vector.broadcast %25 : vector<1x4xf32> to vector<8x4xf32>
    %27 = arith.addf %24, %26 : vector<8x4xf32>
    %28 = vector.extract_strided_slice %27 {offsets = [0, 0], sizes = [8, 2], strides = [1, 1]} : vector<8x4xf32> to vector<8x2xf32>
    %29 = vector.extract_strided_slice %27 {offsets = [0, 2], sizes = [8, 2], strides = [1, 1]} : vector<8x4xf32> to vector<8x2xf32>
    %cst_20 = arith.constant 5.000000e-01 : f32
    %30 = vector.broadcast %cst_20 : f32 to vector<8x2xf32>
    %31 = arith.mulf %30, %29 : vector<8x2xf32>
    %32 = math.exp %31 : vector<8x2xf32>
    %c0_21 = arith.constant 0 : index
    %c0_22 = arith.constant 0 : index
    %33 = vector.load %arg2[%c0_21, %c0_22] : memref<8x2xf32, #tpu.memory_space<vmem>>, vector<8x2xf32>
    %34 = arith.mulf %33, %32 : vector<8x2xf32>
    %35 = arith.addf %34, %28 : vector<8x2xf32>
    %36 = arith.truncf %35 : vector<8x2xf32> to vector<8x2xbf16>
    %c0_23 = arith.constant 0 : index
    %c0_24 = arith.constant 0 : index
    %37 = vector.load %arg11[%c0_23, %c0_24] : memref<2x16xbf16, #tpu.memory_space<vmem>>, vector<2x16xbf16>
    %cst_25 = arith.constant dense<0.000000e+00> : vector<8x16xf32>
    %38 = tpu.matmul %36, %37, %cst_25 {dimension_numbers = #tpu.dot_dimension_numbers<[1], [0], [0], [1], [0, 0, 1, 1], [], []>} : vector<8x2xbf16>, vector<2x16xbf16>, vector<8x16xf32> -> vector<8x16xf32>
    %c0_26 = arith.constant 0 : index
    %c0_27 = arith.constant 0 : index
    %39 = vector.load %arg12[%c0_26, %c0_27] : memref<1x16xf32, #tpu.memory_space<vmem>>, vector<1x16xf32>
    %40 = vector.broadcast %39 : vector<1x16xf32> to vector<8x16xf32>
    %41 = arith.addf %38, %40 : vector<8x16xf32>
    %42 = math.tanh %41 : vector<8x16xf32>
    %43 = arith.truncf %42 : vector<8x16xf32> to vector<8x16xbf16>
    %c0_28 = arith.constant 0 : index
    %c0_29 = arith.constant 0 : index
    %44 = vector.load %arg13[%c0_28, %c0_29] : memref<16x48xbf16, #tpu.memory_space<vmem>>, vector<16x48xbf16>
    %cst_30 = arith.constant dense<0.000000e+00> : vector<8x48xf32>
    %45 = tpu.matmul %43, %44, %cst_30 {dimension_numbers = #tpu.dot_dimension_numbers<[1], [0], [0], [1], [0, 0, 1, 1], [], []>} : vector<8x16xbf16>, vector<16x48xbf16>, vector<8x48xf32> -> vector<8x48xf32>
    %c0_31 = arith.constant 0 : index
    %c0_32 = arith.constant 0 : index
    %46 = vector.load %arg14[%c0_31, %c0_32] : memref<1x48xf32, #tpu.memory_space<vmem>>, vector<1x48xf32>
    %47 = vector.broadcast %46 : vector<1x48xf32> to vector<8x48xf32>
    %48 = arith.addf %45, %47 : vector<8x48xf32>
    %49 = math.tanh %48 : vector<8x48xf32>
    %50 = arith.truncf %49 : vector<8x48xf32> to vector<8x48xbf16>
    %c0_33 = arith.constant 0 : index
    %c0_34 = arith.constant 0 : index
    %51 = vector.load %arg15[%c0_33, %c0_34] : memref<48x256xbf16, #tpu.memory_space<vmem>>, vector<48x256xbf16>
    %cst_35 = arith.constant dense<0.000000e+00> : vector<8x256xf32>
    %52 = tpu.matmul %50, %51, %cst_35 {dimension_numbers = #tpu.dot_dimension_numbers<[1], [0], [0], [1], [0, 0, 1, 1], [], []>} : vector<8x48xbf16>, vector<48x256xbf16>, vector<8x256xf32> -> vector<8x256xf32>
    %c0_36 = arith.constant 0 : index
    %c0_37 = arith.constant 0 : index
    %53 = vector.load %arg16[%c0_36, %c0_37] : memref<1x256xf32, #tpu.memory_space<vmem>>, vector<1x256xf32>
    %54 = vector.broadcast %53 : vector<1x256xf32> to vector<8x256xf32>
    %55 = arith.addf %52, %54 : vector<8x256xf32>
    %56 = math.tanh %55 : vector<8x256xf32>
    %57 = arith.truncf %56 : vector<8x256xf32> to vector<8x256xbf16>
    %c0_38 = arith.constant 0 : index
    %c0_39 = arith.constant 0 : index
    %58 = vector.load %arg17[%c0_38, %c0_39] : memref<256x896xbf16, #tpu.memory_space<vmem>>, vector<256x896xbf16>
    %cst_40 = arith.constant dense<0.000000e+00> : vector<8x896xf32>
    %59 = tpu.matmul %57, %58, %cst_40 {dimension_numbers = #tpu.dot_dimension_numbers<[1], [0], [0], [1], [0, 0, 1, 1], [], []>} : vector<8x256xbf16>, vector<256x896xbf16>, vector<8x896xf32> -> vector<8x896xf32>
    %c0_41 = arith.constant 0 : index
    %c0_42 = arith.constant 0 : index
    %60 = vector.load %arg18[%c0_41, %c0_42] : memref<1x896xf32, #tpu.memory_space<vmem>>, vector<1x896xf32>
    %61 = vector.broadcast %60 : vector<1x896xf32> to vector<8x896xf32>
    %62 = arith.addf %59, %61 : vector<8x896xf32>
    %c0_43 = arith.constant 0 : index
    %c0_44 = arith.constant 0 : index
    %63 = vector.load %arg19[%c0_43, %c0_44] : memref<8x4xf32, #tpu.memory_space<vmem>>, vector<8x4xf32>
    tpu.vector_store %arg19[%c0_43, %c0_44], %27 {strides = array<i32>} : memref<8x4xf32, #tpu.memory_space<vmem>>, vector<8x4xf32>,
    %c0_45 = arith.constant 0 : index
    %c0_46 = arith.constant 0 : index
    %64 = vector.load %arg20[%c0_45, %c0_46] : memref<8x896xf32, #tpu.memory_space<vmem>>, vector<8x896xf32>
    tpu.vector_store %arg20[%c0_45, %c0_46], %62 {strides = array<i32>} : memref<8x896xf32, #tpu.memory_space<vmem>>, vector<8x896xf32>,
    return
  }
  func.func @transform_0(%arg0: i32) -> (i32, i32) {
    %c0_i32 = arith.constant 0 : i32
    %c0_i32_0 = arith.constant 0 : i32
    return %arg0, %c0_i32 : i32, i32
  }
  func.func @transform_1(%arg0: i32) -> (i32, i32) {
    %c0_i32 = arith.constant 0 : i32
    %c0_i32_0 = arith.constant 0 : i32
    return %arg0, %c0_i32 : i32, i32
  }
  func.func @transform_2(%arg0: i32) -> (i32, i32) {
    %c0_i32 = arith.constant 0 : i32
    %c0_i32_0 = arith.constant 0 : i32
    %c0_i32_1 = arith.constant 0 : i32
    return %c0_i32, %c0_i32_0 : i32, i32
  }
  func.func @transform_3(%arg0: i32) -> (i32, i32) {
    %c0_i32 = arith.constant 0 : i32
    %c0_i32_0 = arith.constant 0 : i32
    %c0_i32_1 = arith.constant 0 : i32
    return %c0_i32, %c0_i32_0 : i32, i32
  }
  func.func @transform_4(%arg0: i32) -> (i32, i32) {
    %c0_i32 = arith.constant 0 : i32
    %c0_i32_0 = arith.constant 0 : i32
    %c0_i32_1 = arith.constant 0 : i32
    return %c0_i32, %c0_i32_0 : i32, i32
  }
  func.func @transform_5(%arg0: i32) -> (i32, i32) {
    %c0_i32 = arith.constant 0 : i32
    %c0_i32_0 = arith.constant 0 : i32
    %c0_i32_1 = arith.constant 0 : i32
    return %c0_i32, %c0_i32_0 : i32, i32
  }
  func.func @transform_6(%arg0: i32) -> (i32, i32) {
    %c0_i32 = arith.constant 0 : i32
    %c0_i32_0 = arith.constant 0 : i32
    %c0_i32_1 = arith.constant 0 : i32
    return %c0_i32, %c0_i32_0 : i32, i32
  }
  func.func @transform_7(%arg0: i32) -> (i32, i32) {
    %c0_i32 = arith.constant 0 : i32
    %c0_i32_0 = arith.constant 0 : i32
    %c0_i32_1 = arith.constant 0 : i32
    return %c0_i32, %c0_i32_0 : i32, i32
  }
  func.func @transform_8(%arg0: i32) -> (i32, i32) {
    %c0_i32 = arith.constant 0 : i32
    %c0_i32_0 = arith.constant 0 : i32
    %c0_i32_1 = arith.constant 0 : i32
    return %c0_i32, %c0_i32_0 : i32, i32
  }
  func.func @transform_9(%arg0: i32) -> (i32, i32) {
    %c0_i32 = arith.constant 0 : i32
    %c0_i32_0 = arith.constant 0 : i32
    %c0_i32_1 = arith.constant 0 : i32
    return %c0_i32, %c0_i32_0 : i32, i32
  }
  func.func @transform_10(%arg0: i32) -> (i32, i32) {
    %c0_i32 = arith.constant 0 : i32
    %c0_i32_0 = arith.constant 0 : i32
    %c0_i32_1 = arith.constant 0 : i32
    return %c0_i32, %c0_i32_0 : i32, i32
  }
  func.func @transform_11(%arg0: i32) -> (i32, i32) {
    %c0_i32 = arith.constant 0 : i32
    %c0_i32_0 = arith.constant 0 : i32
    %c0_i32_1 = arith.constant 0 : i32
    return %c0_i32, %c0_i32_0 : i32, i32
  }
  func.func @transform_12(%arg0: i32) -> (i32, i32) {
    %c0_i32 = arith.constant 0 : i32
    %c0_i32_0 = arith.constant 0 : i32
    %c0_i32_1 = arith.constant 0 : i32
    return %c0_i32, %c0_i32_0 : i32, i32
  }
  func.func @transform_13(%arg0: i32) -> (i32, i32) {
    %c0_i32 = arith.constant 0 : i32
    %c0_i32_0 = arith.constant 0 : i32
    %c0_i32_1 = arith.constant 0 : i32
    return %c0_i32, %c0_i32_0 : i32, i32
  }
  func.func @transform_14(%arg0: i32) -> (i32, i32) {
    %c0_i32 = arith.constant 0 : i32
    %c0_i32_0 = arith.constant 0 : i32
    %c0_i32_1 = arith.constant 0 : i32
    return %c0_i32, %c0_i32_0 : i32, i32
  }
  func.func @transform_15(%arg0: i32) -> (i32, i32) {
    %c0_i32 = arith.constant 0 : i32
    %c0_i32_0 = arith.constant 0 : i32
    %c0_i32_1 = arith.constant 0 : i32
    return %c0_i32, %c0_i32_0 : i32, i32
  }
  func.func @transform_16(%arg0: i32) -> (i32, i32) {
    %c0_i32 = arith.constant 0 : i32
    %c0_i32_0 = arith.constant 0 : i32
    %c0_i32_1 = arith.constant 0 : i32
    return %c0_i32, %c0_i32_0 : i32, i32
  }
  func.func @transform_17(%arg0: i32) -> (i32, i32) {
    %c0_i32 = arith.constant 0 : i32
    %c0_i32_0 = arith.constant 0 : i32
    %c0_i32_1 = arith.constant 0 : i32
    return %c0_i32, %c0_i32_0 : i32, i32
  }
  func.func @transform_18(%arg0: i32) -> (i32, i32) {
    %c0_i32 = arith.constant 0 : i32
    %c0_i32_0 = arith.constant 0 : i32
    return %arg0, %c0_i32 : i32, i32
  }
  func.func @transform_19(%arg0: i32) -> (i32, i32) {
    %c0_i32 = arith.constant 0 : i32
    %c0_i32_0 = arith.constant 0 : i32
    return %arg0, %c0_i32 : i32, i32
  }
}

</mosaic_0001>

<bundles_post_ra>
// kernel: vae_forward.1
= control target key start
LH: loop header
LB: loop body
LE: loop exit
PB: predicated region body
PF: predicated region fallthrough
CT: control target
= control target key end

     0   :  { %s3969_s0 = inlined_call_operand.vmem [shape: f32[8,896], index: 0, kind: input, shape index: {}]   ;;  %s3970_s1 = inlined_call_operand.vmem [shape: f32[8,2], index: 1, kind: input, shape index: {}]   ;;  %s3971_s2 = inlined_call_operand.hbm [shape: bf16[896,256], index: 2, kind: input, shape index: {}]   ;;  %s3972_s3 = inlined_call_operand.vmem [shape: f32[1,256], index: 3, kind: input, shape index: {}]   ;;  %s3973_s4 = inlined_call_operand.vmem [shape: bf16[256,48], index: 4, kind: input, shape index: {}]   ;;  %s3974_s5 = inlined_call_operand.vmem [shape: f32[1,48], index: 5, kind: input, shape index: {}]   ;;  %s3975_s6 = inlined_call_operand.vmem [shape: bf16[48,32], index: 6, kind: input, shape index: {}]   ;;  %s3976_s7 = inlined_call_operand.vmem [shape: f32[1,32], index: 7, kind: input, shape index: {}]   ;;  %s3977_s8 = inlined_call_operand.vmem [shape: bf16[32,4], index: 8, kind: input, shape index: {}]   ;;  %s3978_s9 = inlined_call_operand.vmem [shape: f32[1,4], index: 9, kind: input, shape index: {}]   ;;  %s3979_s10 = inlined_call_operand.vmem [shape: bf16[2,16], index: 10, kind: input, shape index: {}]   ;;  %s3980_s11 = inlined_call_operand.vmem [shape: f32[1,16], index: 11, kind: input, shape index: {}]   ;;  %s3981_s12 = inlined_call_operand.vmem [shape: bf16[16,48], index: 12, kind: input, shape index: {}]   ;;  %s3982_s13 = inlined_call_operand.vmem [shape: f32[1,48], index: 13, kind: input, shape index: {}]   ;;  %s3983_s14 = inlined_call_operand.vmem [shape: bf16[48,256], index: 14, kind: input, shape index: {}]   ;;  %s3984_s15 = inlined_call_operand.vmem [shape: f32[1,256], index: 15, kind: input, shape index: {}]   ;;  %s3985_s16 = inlined_call_operand.hbm [shape: bf16[256,896], index: 16, kind: input, shape index: {}]   ;;  %s3986_s17 = inlined_call_operand.vmem [shape: f32[1,896], index: 17, kind: input, shape index: {}]   ;;  %s3987_s18 = inlined_call_operand.vmem [shape: f32[8,4], index: 18, kind: output, shape index: {0}]   ;;  %s3988_s19 = inlined_call_operand.vmem [shape: f32[8,896], index: 19, kind: output, shape index: {1}]  }
   0x1   :  { %3990 = sst [smem:[#allocation8_spill]] %s3969_s0 }
   0x2   :  { %3991 = sst [smem:[#allocation9_spill]] %s3970_s1 }
   0x3   :  { %3992 = sst [smem:[#allocation10_spill]] %s3971_s2 }
   0x4   :  { %3993 = sst [smem:[#allocation11_spill]] %s3972_s3 }
   0x5   :  { %25 = vsyncpa [#allocation3], 0  ;;  %s3994_s20 = sld [smem:[#allocation10_spill]] }
   0xb   :  { %s35_s21 = sshll.u32 %s3994_s20, 4  ;;  %s36_s21 = int_to_ptr.hbm [resolvable:$true] %s35_s21 }
   0xc   :  { %26 = vsyncpa [#allocation5], 0  ;;  %s3630_s1 = smov [#allocation2]   ;;  %s74_s24 = sshll.u32 %s3985_s16, 4  ;;  %s75_s24 = int_to_ptr.hbm [resolvable:$true] %s74_s24 }
   0xd   :  { %s37_s22 = sshll.u32 %s3630_s1, 4  ;;  %s3631_s25 = smov 128   ;;  %s38_s22 = int_to_ptr.vmem [resolvable:$true] %s37_s22 }
   0xe   :  { %s3632_s3 = smov 8   ;;  %s3633_s26 = smov [#allocation4]  }
   0xf   :  { %43 = dma.hbm_to_vmem [thread:$0]  %s36_s21, 14336, %s38_s22, [#allocation3], %s3631_s25, %s3631_s25, %s3632_s3  }
  0x10   :  { %s76_s27 = sshll.u32 %s3633_s26, 4  ;;  %s3634_s28 = smov 448   ;;  %s77_s27 = int_to_ptr.vmem [resolvable:$true] %s76_s27 }
  0x11   :  { %s3635_s29 = smov 28  }
  0x12   :  { %82 = dma.hbm_to_vmem [thread:$0]  %s75_s24, 14336, %s77_s27, [#allocation5], %s3634_s28, %s3634_s28, %s3635_s29  }
  0x13   :  { %3626 = dma.done.wait [#allocation3], 14336  }
  0x14   :  { %3627 = vsyncadd [#allocation3], 4294952960 }
  0x15   :  { %3628 = dma.done.wait [#allocation5], 14336  }
  0x16   :  { %3629 = vsyncadd [#allocation5], 4294952960  ;;  %v2340_v0 = vld [vmem:[#allocation2 + $0x70] sm:$0xf]  ;;  %v3311_v1 = vld [vmem:[#allocation2 + $0x74] sm:$0xf0] }
  0x17   :  { %v2404_v2 = vld [vmem:[#allocation2 + $0xf0] sm:$0xf]  ;;  %v2341_v3 = vor.u32 %v3311_v1, %v2340_v0  ;;  %v3327_v4 = vld [vmem:[#allocation2 + $0xf4] sm:$0xf0]  ;;  %v2332_v9 = vld [vmem:[#allocation2 + $0x60] sm:$0xf] }
  0x18   :  { %v2468_v5 = vld [vmem:[#allocation2 + $0x170] sm:$0xf]  ;;  %v3343_v6 = vld [vmem:[#allocation2 + $0x174] sm:$0xf0]  ;;  %v2405_v7 = vor.u32 %v3327_v4, %v2404_v2  ;;  %v3309_v10 = vld [vmem:[#allocation2 + $0x64] sm:$0xf0] }
  0x19   :  { %v2469_v8 = vor.u32 %v3343_v6, %v2468_v5  ;;  %v2396_v11 = vld [vmem:[#allocation2 + $0xe0] sm:$0xf]  ;;  %786 = vmatpush.bf16.msra.mxu0 %v2341_v3  ;;  %v2333_v12 = vor.u32 %v3309_v10, %v2332_v9  ;;  %v3325_v13 = vld [vmem:[#allocation2 + $0xe4] sm:$0xf0]  ;;  %v2324_v18 = vld [vmem:[#allocation2 + $0x50] sm:$0xf] }
  0x1a   :  { %v2460_v14 = vld [vmem:[#allocation2 + $0x160] sm:$0xf]  ;;  %v3341_v15 = vld [vmem:[#allocation2 + $0x164] sm:$0xf0]  ;;  %799 = vmatpush.bf16.msra.mxu1 %v2405_v7  ;;  %v2397_v16 = vor.u32 %v3325_v13, %v2396_v11  ;;  %v3307_v19 = vld [vmem:[#allocation2 + $0x54] sm:$0xf0] }
  0x1b   :  { %812 = vmatpush.bf16.msra.mxu2 %v2469_v8  ;;  %v2461_v17 = vor.u32 %v3341_v15, %v2460_v14  ;;  %v2388_v20 = vld [vmem:[#allocation2 + $0xd0] sm:$0xf]  ;;  %v3323_v21 = vld [vmem:[#allocation2 + $0xd4] sm:$0xf0]  ;;  %v2325_v24 = vor.u32 %v3307_v19, %v2324_v18  ;;  %v2316_v25 = vld [vmem:[#allocation2 + $0x40] sm:$0xf] }
  0x1c   :  { %v2452_v22 = vld [vmem:[#allocation2 + $0x150] sm:$0xf]  ;;  %v3339_v23 = vld [vmem:[#allocation2 + $0x154] sm:$0xf0]  ;;  %v3305_v26 = vld [vmem:[#allocation2 + $0x44] sm:$0xf0]  ;;  %v2389_v27 = vor.u32 %v3323_v21, %v2388_v20 }
  0x1d   :  { %787 = vmatpush.bf16.msra.mxu0 %v2333_v12  ;;  %v2453_v28 = vor.u32 %v3339_v23, %v2452_v22  ;;  %v2380_v29 = vld [vmem:[#allocation2 + $0xc0] sm:$0xf]  ;;  %v2532_v30 = vld [vmem:[#allocation2 + $0x1f0] sm:$0xf]  ;;  %v3359_v31 = vld [vmem:[#allocation2 + $0x1f4] sm:$0xf0]  ;;  %v2317_v37 = vor.u32 %v3305_v26, %v2316_v25 }
  0x1e   :  { %800 = vmatpush.bf16.msra.mxu1 %v2397_v16  ;;  %v3321_v32 = vld [vmem:[#allocation2 + $0xc4] sm:$0xf0]  ;;  %v2444_v33 = vld [vmem:[#allocation2 + $0x140] sm:$0xf]  ;;  %v2533_v35 = vor.u32 %v3359_v31, %v2532_v30  ;;  %v2308_v38 = vld [vmem:[#allocation2 + $0x30] sm:$0xf] }
  0x1f   :  { %813 = vmatpush.bf16.msra.mxu2 %v2461_v17  ;;  %v3337_v34 = vld [vmem:[#allocation2 + $0x144] sm:$0xf0]  ;;  %v2524_v36 = vld [vmem:[#allocation2 + $0x1e0] sm:$0xf]  ;;  %v3303_v39 = vld [vmem:[#allocation2 + $0x34] sm:$0xf0]  ;;  %v2381_v41 = vor.u32 %v3321_v32, %v2380_v29 }
  0x20   :  { %825 = vmatpush.bf16.msra.mxu3 %v2533_v35  ;;  %v3357_v40 = vld [vmem:[#allocation2 + $0x1e4] sm:$0xf0]  ;;  %v2445_v42 = vor.u32 %v3337_v34, %v2444_v33  ;;  %v2372_v43 = vld [vmem:[#allocation2 + $0xb0] sm:$0xf]  ;;  %v3319_v44 = vld [vmem:[#allocation2 + $0xb4] sm:$0xf0]  ;;  %v2309_v50 = vor.u32 %v3303_v39, %v2308_v38 }
  0x21   :  { %788 = vmatpush.bf16.msra.mxu0 %v2325_v24  ;;  %v2436_v45 = vld [vmem:[#allocation2 + $0x130] sm:$0xf]  ;;  %v2525_v46 = vor.u32 %v3357_v40, %v2524_v36  ;;  %v3335_v47 = vld [vmem:[#allocation2 + $0x134] sm:$0xf0]  ;;  %v2300_v51 = vld [vmem:[#allocation2 + $0x20] sm:$0xf]  ;;  %v2373_v54 = vor.u32 %v3319_v44, %v2372_v43 }
  0x22   :  { %801 = vmatpush.bf16.msra.mxu1 %v2389_v27  ;;  %v2516_v48 = vld [vmem:[#allocation2 + $0x1d0] sm:$0xf]  ;;  %v3355_v49 = vld [vmem:[#allocation2 + $0x1d4] sm:$0xf0]  ;;  %v3301_v52 = vld [vmem:[#allocation2 + $0x24] sm:$0xf0]  ;;  %v2437_v55 = vor.u32 %v3335_v47, %v2436_v45 }
  0x23   :  { %814 = vmatpush.bf16.msra.mxu2 %v2453_v28  ;;  %v2517_v53 = vor.u32 %v3355_v49, %v2516_v48  ;;  %v2364_v56 = vld [vmem:[#allocation2 + $0xa0] sm:$0xf]  ;;  %v3353_v58 = vld [vmem:[#allocation2 + $0x1c4] sm:$0xf0]  ;;  %v2301_v62 = vor.u32 %v3301_v52, %v2300_v51  ;;  %v2292_v63 = vld [vmem:[#allocation2 + $0x10] sm:$0xf] }
  0x24   :  { %826 = vmatpush.bf16.msra.mxu3 %v2525_v46  ;;  %v2508_v57 = vld [vmem:[#allocation2 + $0x1c0] sm:$0xf]  ;;  %v3317_v59 = vld [vmem:[#allocation2 + $0xa4] sm:$0xf0]  ;;  %v3299_v0 = vld [vmem:[#allocation2 + $0x14] sm:$0xf0] }
  0x25   :  { %789 = vmatpush.bf16.msra.mxu0 %v2317_v37  ;;  %v2428_v60 = vld [vmem:[#allocation2 + $0x120] sm:$0xf]  ;;  %v3333_v61 = vld [vmem:[#allocation2 + $0x124] sm:$0xf0]  ;;  %v2509_v1 = vor.u32 %v3353_v58, %v2508_v57  ;;  %v2365_v2 = vor.u32 %v3317_v59, %v2364_v56  ;;  %v2356_v4 = vld [vmem:[#allocation2 + $0x90] sm:$0xf]  ;;  %v2293_v10 = vor.u32 %v3299_v0, %v2292_v63 }
  0x26   :  { %802 = vmatpush.bf16.msra.mxu1 %v2381_v41  ;;  %v2429_v3 = vor.u32 %v3333_v61, %v2428_v60  ;;  %v2500_v5 = vld [vmem:[#allocation2 + $0x1b0] sm:$0xf]  ;;  %v3351_v6 = vld [vmem:[#allocation2 + $0x1b4] sm:$0xf0]  ;;  %v2284_v11 = vld [vmem:[#allocation2] sm:$0xf] }
  0x27   :  { %815 = vmatpush.bf16.msra.mxu2 %v2445_v42  ;;  %v3315_v7 = vld [vmem:[#allocation2 + $0x94] sm:$0xf0]  ;;  %v2420_v8 = vld [vmem:[#allocation2 + $0x110] sm:$0xf]  ;;  %v3297_v12 = vld [vmem:[#allocation2 + $0x4] sm:$0xf0]  ;;  %v2501_v14 = vor.u32 %v3351_v6, %v2500_v5 }
  0x28   :  { %827 = vmatpush.bf16.msra.mxu3 %v2517_v53  ;;  %v3331_v9 = vld [vmem:[#allocation2 + $0x114] sm:$0xf0]  ;;  %v2348_v13 = vld [vmem:[#allocation2 + $0x80] sm:$0xf]  ;;  %v2357_v15 = vor.u32 %v3315_v7, %v2356_v4  ;;  %v3313_v17 = vld [vmem:[#allocation2 + $0x84] sm:$0xf0]  ;;  %v2285_v26 = vor.u32 %v3297_v12, %v2284_v11 }
  0x29   :  { %790 = vmatpush.bf16.msra.mxu0 %v2309_v50  ;;  %v2421_v16 = vor.u32 %v3331_v9, %v2420_v8  ;;  %v2492_v18 = vld [vmem:[#allocation2 + $0x1a0] sm:$0xf]  ;;  %v3349_v19 = vld [vmem:[#allocation2 + $0x1a4] sm:$0xf0]  ;;  %v2596_v22 = vld [vmem:[#allocation2 + $0x270] sm:$0xf]  ;;  %v2349_v30 = vor.u32 %v3313_v17, %v2348_v13 }
  0x2a   :  { %803 = vmatpush.bf16.msra.mxu1 %v2373_v54  ;;  %v2412_v20 = vld [vmem:[#allocation2 + $0x100] sm:$0xf]  ;;  %v3329_v21 = vld [vmem:[#allocation2 + $0x104] sm:$0xf0]  ;;  %v3375_v23 = vld [vmem:[#allocation2 + $0x274] sm:$0xf0]  ;;  %v2493_v29 = vor.u32 %v3349_v19, %v2492_v18 }
  0x2b   :  { %816 = vmatpush.bf16.msra.mxu2 %v2437_v55  ;;  %v2660_v24 = vld [vmem:[#allocation2 + $0x2f0] sm:$0xf]  ;;  %v3391_v25 = vld [vmem:[#allocation2 + $0x2f4] sm:$0xf0]  ;;  %v2413_v31 = vor.u32 %v3329_v21, %v2412_v20  ;;  %v2597_v34 = vor.u32 %v3375_v23, %v2596_v22  ;;  %v2588_v36 = vld [vmem:[#allocation2 + $0x260] sm:$0xf] }
  0x2c   :  { %828 = vmatpush.bf16.msra.mxu3 %v2509_v1  ;;  %v2724_v27 = vld [vmem:[#allocation2 + $0x370] sm:$0xf]  ;;  %v3407_v28 = vld [vmem:[#allocation2 + $0x374] sm:$0xf0]  ;;  %v2661_v35 = vor.u32 %v3391_v25, %v2660_v24  ;;  %v3373_v37 = vld [vmem:[#allocation2 + $0x264] sm:$0xf0] }
  0x2d   :  { %791 = vmatpush.bf16.msra.mxu0 %v2301_v62  ;;  %v2484_v32 = vld [vmem:[#allocation2 + $0x190] sm:$0xf]  ;;  %v3347_v33 = vld [vmem:[#allocation2 + $0x194] sm:$0xf0]  ;;  %v2725_v38 = vor.u32 %v3407_v28, %v2724_v27  ;;  %v2652_v39 = vld [vmem:[#allocation2 + $0x2e0] sm:$0xf]  ;;  %v2589_v50 = vor.u32 %v3373_v37, %v2588_v36 }
  0x2e   :  { %804 = vmatpush.bf16.msra.mxu1 %v2365_v2  ;;  %v3389_v40 = vld [vmem:[#allocation2 + $0x2e4] sm:$0xf0]  ;;  %s3995_s30 = sld [smem:[#allocation8_spill]]  ;;  %v2716_v42 = vld [vmem:[#allocation2 + $0x360] sm:$0xf]  ;;  %v2485_v44 = vor.u32 %v3347_v33, %v2484_v32  ;;  %vm1160_vm0 = vcmask 392192  }
  0x2f   :  { %817 = vmatpush.bf16.msra.mxu2 %v2429_v3  ;;  %v3405_v43 = vld [vmem:[#allocation2 + $0x364] sm:$0xf0]  ;;  %v2580_v46 = vld [vmem:[#allocation2 + $0x250] sm:$0xf]  ;;  %v2476_v47 = vld [vmem:[#allocation2 + $0x180] sm:$0xf]  ;;  %v2653_v51 = vor.u32 %v3389_v40, %v2652_v39 }
  0x30   :  { %829 = vmatpush.bf16.msra.mxu3 %v2501_v14  ;;  %v3345_v48 = vld [vmem:[#allocation2 + $0x184] sm:$0xf0]  ;;  %v3310_v52 = vld [vmem:[#allocation2 + $0x74] sm:$0xf]  ;;  %v2342_v53 = vld [vmem:[#allocation2 + $0x78] sm:$0xf0]  ;;  %v2717_v56 = vor.u32 %v3405_v43, %v2716_v42 }
  0x31   :  { %792 = vmatpush.bf16.msra.mxu0 %v2293_v10  ;;  %v3371_v57 = vld [vmem:[#allocation2 + $0x254] sm:$0xf0]  ;;  %v2644_v58 = vld [vmem:[#allocation2 + $0x2d0] sm:$0xf]  ;;  %v2477_v63 = vor.u32 %v3345_v48, %v2476_v47  ;;  %v2572_v0 = vld [vmem:[#allocation2 + $0x240] sm:$0xf]  ;;  %v2345_v1 = vor.u32 %v3310_v52, %v2342_v53 }
  0x32   :  { %805 = vmatpush.bf16.msra.mxu1 %v2357_v15  ;;  %v3387_v59 = vld [vmem:[#allocation2 + $0x2d4] sm:$0xf0]  ;;  %v2708_v61 = vld [vmem:[#allocation2 + $0x350] sm:$0xf]  ;;  %v2581_v2 = vor.u32 %v3371_v57, %v2580_v46  ;;  %v3369_v4 = vld [vmem:[#allocation2 + $0x244] sm:$0xf0] }
  0x33   :  { %818 = vmatpush.bf16.msra.mxu2 %v2421_v16  ;;  %v3403_v62 = vld [vmem:[#allocation2 + $0x354] sm:$0xf0]  ;;  %v2645_v3 = vor.u32 %v3387_v59, %v2644_v58  ;;  %v3308_v5 = vld [vmem:[#allocation2 + $0x64] sm:$0xf]  ;;  %v2334_v6 = vld [vmem:[#allocation2 + $0x68] sm:$0xf0]  ;;  %v2573_v15 = vor.u32 %v3369_v4, %v2572_v0 }
  0x34   :  { %v96_v41 = vld [vmem:[%s3995_s30 + $0x10] sm:$0xff]  ;;  %830 = vmatpush.bf16.msra.mxu3 %v2493_v29  ;;  %v94_v49 = vld [vmem:[%s3995_s30] sm:$0xff]  ;;  %v95_v55 = vld [vmem:[%s3995_s30 + $0x8] sm:$0xff]  ;;  %v2709_v7 = vor.u32 %v3403_v62, %v2708_v61  ;;  %v2337_v14 = vor.u32 %v3308_v5, %v2334_v6  ;;  %s3996_s27 = sld [smem:[#allocation11_spill]]  ;;  %vm1199_vm1 = vcmask 261120   ;;  %vm2263_vm2 = vcmask 31744  }
  0x35   :  { %793 = vmatpush.bf16.msra.mxu0 %v2285_v26  ;;  %v3746_v45 = vpack.c.bf16 %v96_v41, %v96_v41  ;;  %v3751_v54 = vpack.c.bf16 %v94_v49, %v94_v49  ;;  %v3756_v60 = vpack.c.bf16 %v95_v55, %v95_v55  ;;  %v2636_v8 = vld [vmem:[#allocation2 + $0x2c0] sm:$0xf]  ;;  %v3385_v9 = vld [vmem:[#allocation2 + $0x2c4] sm:$0xf0]  ;;  %v97_v10 = vld [vmem:[%s3995_s30 + $0x18] sm:$0xff]  ;;  %vm1236_vm3 = vcmask 1040384  }
  0x36   :  { %806 = vmatpush.bf16.msra.mxu1 %v2349_v30  ;;  %v2700_v11 = vld [vmem:[#allocation2 + $0x340] sm:$0xf]  ;;  %v3401_v12 = vld [vmem:[#allocation2 + $0x344] sm:$0xf0]  ;;  %v3764_v13 = vpack.c.bf16 %v97_v10, %v97_v10  ;;  %v2637_v16 = vor.u32 %v3385_v9, %v2636_v8  ;;  %v2564_v17 = vld [vmem:[#allocation2 + $0x230] sm:$0xf] }
  0x37   :  { %819 = vmatpush.bf16.msra.mxu2 %v2413_v31  ;;  %v3306_v18 = vld [vmem:[#allocation2 + $0x54] sm:$0xf]  ;;  %v2326_v19 = vld [vmem:[#allocation2 + $0x58] sm:$0xf0]  ;;  %v2701_v20 = vor.u32 %v3401_v12, %v2700_v11  ;;  %v3367_v21 = vld [vmem:[#allocation2 + $0x234] sm:$0xf0] }
  0x38   :  { %831 = vmatpush.bf16.msra.mxu3 %v2485_v44  ;;  %794 = vmatmul.bf16.vlgmr.msra.gmra.mxu0 %v3751_v54  ;;  %v2628_v22 = vld [vmem:[#allocation2 + $0x2b0] sm:$0xf]  ;;  %v3383_v23 = vld [vmem:[#allocation2 + $0x2b4] sm:$0xf0]  ;;  %v2329_v26 = vor.u32 %v3306_v18, %v2326_v19  ;;  %v2565_v27 = vor.u32 %v3367_v21, %v2564_v17  ;;  %v2556_v29 = vld [vmem:[#allocation2 + $0x220] sm:$0xf] }
  0x39   :  { %838 = vmatpush.bf16.msrb.mxu0 %v2597_v34  ;;  %807 = vmatmul.bf16.vlgmr.msra.gmra.mxu1 %v3756_v60  ;;  %v2692_v24 = vld [vmem:[#allocation2 + $0x330] sm:$0xf]  ;;  %v3399_v25 = vld [vmem:[#allocation2 + $0x334] sm:$0xf0]  ;;  %v2629_v28 = vor.u32 %v3383_v23, %v2628_v22  ;;  %v3304_v30 = vld [vmem:[#allocation2 + $0x44] sm:$0xf] }
  0x3a   :  { %851 = vmatpush.bf16.msrb.mxu1 %v2661_v35  ;;  %820 = vmatmul.bf16.vlgmr.msra.gmra.mxu2 %v3746_v45  ;;  %v2318_v31 = vld [vmem:[#allocation2 + $0x48] sm:$0xf0]  ;;  %v2693_v32 = vor.u32 %v3399_v25, %v2692_v24  ;;  %v3365_v33 = vld [vmem:[#allocation2 + $0x224] sm:$0xf0]  ;;  %v2620_v34 = vld [vmem:[#allocation2 + $0x2a0] sm:$0xf] }
  0x3b   :  { %864 = vmatpush.bf16.msrb.mxu2 %v2725_v38  ;;  %v3381_v35 = vld [vmem:[#allocation2 + $0x2a4] sm:$0xf0]  ;;  %v2684_v36 = vld [vmem:[#allocation2 + $0x320] sm:$0xf]  ;;  %v2321_v38 = vor.u32 %v3304_v30, %v2318_v31  ;;  %v2557_v39 = vor.u32 %v3365_v33, %v2556_v29  ;;  %v2548_v41 = vld [vmem:[#allocation2 + $0x210] sm:$0xf] }
  0x3c   :  { %832 = vmatpush.bf16.msra.mxu3 %v2477_v63  ;;  %v3397_v37 = vld [vmem:[#allocation2 + $0x324] sm:$0xf0]  ;;  %v2621_v40 = vor.u32 %v3381_v35, %v2620_v34  ;;  %v3302_v42 = vld [vmem:[#allocation2 + $0x34] sm:$0xf]  ;;  %v2310_v43 = vld [vmem:[#allocation2 + $0x38] sm:$0xf0] }
  0x3d   :  { %839 = vmatpush.bf16.msrb.mxu0 %v2589_v50  ;;  %v2685_v44 = vor.u32 %v3397_v37, %v2684_v36  ;;  %v3363_v46 = vld [vmem:[#allocation2 + $0x214] sm:$0xf0]  ;;  %v2612_v47 = vld [vmem:[#allocation2 + $0x290] sm:$0xf]  ;;  %v3361_v52 = vld [vmem:[#allocation2 + $0x204] sm:$0xf0]  ;;  %v2313_v53 = vor.u32 %v3302_v42, %v2310_v43 }
  0x3e   :  { %852 = vmatpush.bf16.msrb.mxu1 %v2653_v51  ;;  %v3379_v48 = vld [vmem:[#allocation2 + $0x294] sm:$0xf0]  ;;  %v2676_v49 = vld [vmem:[#allocation2 + $0x310] sm:$0xf]  ;;  %v2540_v51 = vld [vmem:[#allocation2 + $0x200] sm:$0xf]  ;;  %v2549_v55 = vor.u32 %v3363_v46, %v2548_v41 }
  0x3f   :  { %865 = vmatpush.bf16.msrb.mxu2 %v2717_v56  ;;  %833 = vmatmul.bf16.vlgmr.msra.gmra.mxu3 %v3764_v13  ;;  %v3395_v50 = vld [vmem:[#allocation2 + $0x314] sm:$0xf0]  ;;  %v2613_v56 = vor.u32 %v3379_v48, %v2612_v47  ;;  %v2604_v57 = vld [vmem:[#allocation2 + $0x280] sm:$0xf]  ;;  %v3300_v58 = vld [vmem:[#allocation2 + $0x24] sm:$0xf]  ;;  %v2541_v8 = vor.u32 %v3361_v52, %v2540_v51 }
  0x40   :  { %877 = vmatpush.bf16.msrb.mxu3 %v2345_v1  ;;  %v2302_v59 = vld [vmem:[#allocation2 + $0x28] sm:$0xf0]  ;;  %v2677_v61 = vor.u32 %v3395_v50, %v2676_v49  ;;  %v3377_v62 = vld [vmem:[#allocation2 + $0x284] sm:$0xf0]  ;;  %v2668_v63 = vld [vmem:[#allocation2 + $0x300] sm:$0xf] }
  0x41   :  { %840 = vmatpush.bf16.msrb.mxu0 %v2581_v2  ;;  %v3393_v0 = vld [vmem:[#allocation2 + $0x304] sm:$0xf0]  ;;  %v3326_v1 = vld [vmem:[#allocation2 + $0xf4] sm:$0xf]  ;;  %v2406_v2 = vld [vmem:[#allocation2 + $0xf8] sm:$0xf0]  ;;  %v2305_v5 = vor.u32 %v3300_v58, %v2302_v59  ;;  %v2605_v9 = vor.u32 %v3377_v62, %v2604_v57 }
  0x42   :  { %853 = vmatpush.bf16.msrb.mxu1 %v2645_v3  ;;  %v3342_v3 = vld [vmem:[#allocation2 + $0x174] sm:$0xf]  ;;  %v2470_v4 = vld [vmem:[#allocation2 + $0x178] sm:$0xf0]  ;;  %v98_v10 = vld [vmem:[%s3995_s30 + $0x20] sm:$0xff]  ;;  %v2669_v12 = vor.u32 %v3393_v0, %v2668_v63  ;;  %vm1232_vm4 = vcmask 15360  }
  0x43   :  { %866 = vmatpush.bf16.msrb.mxu2 %v2709_v7  ;;  %v3358_v6 = vld [vmem:[#allocation2 + $0x1f4] sm:$0xf]  ;;  %v2534_v7 = vld [vmem:[#allocation2 + $0x1f8] sm:$0xf0]  ;;  %v99_v11 = vld [vmem:[%s3995_s30 + $0x28] sm:$0xff]  ;;  %v2473_v18 = vor.u32 %v3342_v3, %v2470_v4  ;;  %v3776_v23 = vpack.c.bf16 %v98_v10, %v98_v10  ;;  %vm1267_vm5 = vcmask 130048  }
  0x44   :  { %878 = vmatpush.bf16.msrb.mxu3 %v2337_v14  ;;  %v2409_v14 = vor.u32 %v3326_v1, %v2406_v2  ;;  %v2294_v17 = vld [vmem:[#allocation2 + $0x18] sm:$0xf0]  ;;  %v3324_v19 = vld [vmem:[#allocation2 + $0xe4] sm:$0xf]  ;;  %v2537_v22 = vor.u32 %v3358_v6, %v2534_v7  ;;  %v2462_v24 = vld [vmem:[#allocation2 + $0x168] sm:$0xf0]  ;;  %v3778_v25 = vpack.c.bf16 %v99_v11, %v99_v11 }
  0x45   :  { %841 = vmatpush.bf16.msrb.mxu0 %v2573_v15  ;;  %v100_v15 = vld [vmem:[%s3995_s30 + $0x30] sm:$0xff]  ;;  %v3340_v21 = vld [vmem:[#allocation2 + $0x164] sm:$0xf]  ;;  %v2286_v34 = vld [vmem:[#allocation2 + $0x8] sm:$0xf0]  ;;  %s3997_s30 = sld [smem:[#allocation9_spill]] }
  0x46   :  { %854 = vmatpush.bf16.msrb.mxu1 %v2637_v16  ;;  %v3298_v16 = vld [vmem:[#allocation2 + $0x14] sm:$0xf]  ;;  %v3296_v33 = vld [vmem:[#allocation2 + $0x4] sm:$0xf]  ;;  %v2465_v35 = vor.u32 %v3340_v21, %v2462_v24  ;;  %v2518_v42 = vld [vmem:[#allocation2 + $0x1d8] sm:$0xf0] }
  0x47   :  { %867 = vmatpush.bf16.msrb.mxu2 %v2701_v20  ;;  %v2398_v20 = vld [vmem:[#allocation2 + $0xe8] sm:$0xf0]  ;;  %v2297_v29 = vor.u32 %v3298_v16, %v2294_v17  ;;  %v3322_v30 = vld [vmem:[#allocation2 + $0xd4] sm:$0xf]  ;;  %v2289_v43 = vor.u32 %v3296_v33, %v2286_v34  ;;  %v3320_v46 = vld [vmem:[#allocation2 + $0xc4] sm:$0xf] }
  0x48   :  { %879 = vmatpush.bf16.msrb.mxu3 %v2329_v26  ;;  %v3356_v26 = vld [vmem:[#allocation2 + $0x1e4] sm:$0xf]  ;;  %v2401_v31 = vor.u32 %v3324_v19, %v2398_v20  ;;  %v3338_v36 = vld [vmem:[#allocation2 + $0x154] sm:$0xf]  ;;  %v2382_v47 = vld [vmem:[#allocation2 + $0xc8] sm:$0xf0] }
  0x49   :  { %842 = vmatpush.bf16.msrb.mxu0 %v2565_v27  ;;  %v2526_v27 = vld [vmem:[#allocation2 + $0x1e8] sm:$0xf0]  ;;  %v3374_v37 = vld [vmem:[#allocation2 + $0x274] sm:$0xf]  ;;  %v3336_v50 = vld [vmem:[#allocation2 + $0x144] sm:$0xf]  ;;  %v2385_v59 = vor.u32 %v3320_v46, %v2382_v47 }
  0x4a   :  { %855 = vmatpush.bf16.msrb.mxu1 %v2629_v28  ;;  %v3780_v28 = vpack.c.bf16 %v100_v15, %v100_v15  ;;  %v3354_v41 = vld [vmem:[#allocation2 + $0x1d4] sm:$0xf]  ;;  %v3372_v51 = vld [vmem:[#allocation2 + $0x264] sm:$0xf]  ;;  %v2590_v52 = vld [vmem:[#allocation2 + $0x268] sm:$0xf0] }
  0x4b   :  { %868 = vmatpush.bf16.msrb.mxu2 %v2693_v32  ;;  %v2390_v32 = vld [vmem:[#allocation2 + $0xd8] sm:$0xf0]  ;;  %v2510_v57 = vld [vmem:[#allocation2 + $0x1c8] sm:$0xf0]  ;;  %v3318_v58 = vld [vmem:[#allocation2 + $0xb4] sm:$0xf]  ;;  %v2593_v0 = vor.u32 %v3372_v51, %v2590_v52 }
  0x4c   :  { %880 = vmatpush.bf16.msrb.mxu3 %v2321_v38  ;;  %v2598_v38 = vld [vmem:[#allocation2 + $0x278] sm:$0xf0]  ;;  %v3334_v62 = vld [vmem:[#allocation2 + $0x134] sm:$0xf]  ;;  %v3316_v7 = vld [vmem:[#allocation2 + $0xa4] sm:$0xf] }
  0x4d   :  { %843 = vmatpush.bf16.msrb.mxu0 %v2557_v39  ;;  %v2529_v39 = vor.u32 %v3356_v26, %v2526_v27  ;;  %v2601_v48 = vor.u32 %v3374_v37, %v2598_v38  ;;  %v2438_v63 = vld [vmem:[#allocation2 + $0x138] sm:$0xf0]  ;;  %v3370_v2 = vld [vmem:[#allocation2 + $0x254] sm:$0xf]  ;;  %v2574_v15 = vld [vmem:[#allocation2 + $0x248] sm:$0xf0] }
  0x4e   :  { %856 = vmatpush.bf16.msrb.mxu1 %v2621_v40  ;;  %v2454_v40 = vld [vmem:[#allocation2 + $0x158] sm:$0xf0]  ;;  %v2441_v11 = vor.u32 %v3334_v62, %v2438_v63  ;;  %v2430_v17 = vld [vmem:[#allocation2 + $0x128] sm:$0xf0]  ;;  %v3330_v26 = vld [vmem:[#allocation2 + $0x114] sm:$0xf] }
  0x4f   :  { %869 = vmatpush.bf16.msrb.mxu2 %v2685_v44  ;;  %v2393_v44 = vor.u32 %v3322_v30, %v2390_v32  ;;  %v2457_v49 = vor.u32 %v3338_v36, %v2454_v40  ;;  %v2582_v3 = vld [vmem:[#allocation2 + $0x258] sm:$0xf0]  ;;  %v2494_v19 = vld [vmem:[#allocation2 + $0x1a8] sm:$0xf0]  ;;  %v3366_v27 = vld [vmem:[#allocation2 + $0x234] sm:$0xf] }
  0x50   :  { %881 = vmatpush.bf16.msrb.mxu3 %v2313_v53  ;;  %v2521_v53 = vor.u32 %v3354_v41, %v2518_v42  ;;  %v2502_v6 = vld [vmem:[#allocation2 + $0x1b8] sm:$0xf0]  ;;  %v2585_v10 = vor.u32 %v3370_v2, %v2582_v3  ;;  %v3346_v32 = vld [vmem:[#allocation2 + $0x194] sm:$0xf]  ;;  %v2350_v36 = vld [vmem:[#allocation2 + $0x88] sm:$0xf0] }
  0x51   :  { %844 = vmatpush.bf16.msrb.mxu0 %v2549_v55  ;;  %v2446_v55 = vld [vmem:[#allocation2 + $0x148] sm:$0xf0]  ;;  %v2358_v21 = vld [vmem:[#allocation2 + $0x98] sm:$0xf0]  ;;  %v3328_v37 = vld [vmem:[#allocation2 + $0x104] sm:$0xf] }
  0x52   :  { %857 = vmatpush.bf16.msrb.mxu1 %v2613_v56  ;;  %v3352_v56 = vld [vmem:[#allocation2 + $0x1c4] sm:$0xf]  ;;  %v2449_v1 = vor.u32 %v3336_v50, %v2446_v55  ;;  %v2486_v33 = vld [vmem:[#allocation2 + $0x198] sm:$0xf0]  ;;  %v2414_v40 = vld [vmem:[#allocation2 + $0x108] sm:$0xf0] }
  0x53   :  { %870 = vmatpush.bf16.msrb.mxu2 %v2677_v61  ;;  %v2374_v61 = vld [vmem:[#allocation2 + $0xb8] sm:$0xf0]  ;;  %v2513_v4 = vor.u32 %v3352_v56, %v2510_v57  ;;  %v3364_v41 = vld [vmem:[#allocation2 + $0x224] sm:$0xf]  ;;  %v2558_v42 = vld [vmem:[#allocation2 + $0x228] sm:$0xf0] }
  0x54   :  { %882 = vmatpush.bf16.msrb.mxu3 %v2305_v5  ;;  %v3350_v5 = vld [vmem:[#allocation2 + $0x1b4] sm:$0xf]  ;;  %v2662_v46 = vld [vmem:[#allocation2 + $0x2f8] sm:$0xf0]  ;;  %v2478_v50 = vld [vmem:[#allocation2 + $0x188] sm:$0xf0]  ;;  %v2561_v52 = vor.u32 %v3364_v41, %v2558_v42 }
  0x55   :  { %845 = vmatpush.bf16.msrb.mxu0 %v2541_v8  ;;  %v2377_v8 = vor.u32 %v3318_v58, %v2374_v61  ;;  %v2505_v16 = vor.u32 %v3350_v5, %v2502_v6  ;;  %v3406_v47 = vld [vmem:[#allocation2 + $0x374] sm:$0xf]  ;;  %v2550_v57 = vld [vmem:[#allocation2 + $0x218] sm:$0xf0]  ;;  %v2654_v61 = vld [vmem:[#allocation2 + $0x2e8] sm:$0xf0] }
  0x56   :  { %858 = vmatpush.bf16.msrb.mxu1 %v2605_v9  ;;  %v2366_v9 = vld [vmem:[#allocation2 + $0xa8] sm:$0xf0]  ;;  %v3362_v56 = vld [vmem:[#allocation2 + $0x214] sm:$0xf]  ;;  %v3404_v63 = vld [vmem:[#allocation2 + $0x364] sm:$0xf] }
  0x57   :  { %871 = vmatpush.bf16.msrb.mxu2 %v2669_v12  ;;  %v3332_v12 = vld [vmem:[#allocation2 + $0x124] sm:$0xf]  ;;  %v2369_v20 = vor.u32 %v3316_v7, %v2366_v9  ;;  %v3386_v6 = vld [vmem:[#allocation2 + $0x2d4] sm:$0xf]  ;;  %v2646_v7 = vld [vmem:[#allocation2 + $0x2d8] sm:$0xf0] }
  0x58   :  { %846 = vmatmul.bf16.vlgmr.msrb.gmra.mxu0 %v3776_v23  ;;  %883 = vmatpush.bf16.msrb.mxu3 %v2297_v29  ;;  %v2433_v24 = vor.u32 %v3332_v12, %v2430_v17  ;;  %v2566_v29 = vld [vmem:[#allocation2 + $0x238] sm:$0xf0]  ;;  %v3360_v3 = vld [vmem:[#allocation2 + $0x204] sm:$0xf]  ;;  %v2702_v17 = vld [vmem:[#allocation2 + $0x348] sm:$0xf0] }
  0x59   :  { %890 = vmatpush.bf16.msra.mxu0 %v2409_v14  ;;  %859 = vmatmul.bf16.vlgmr.msrb.gmra.mxu1 %v3778_v25  ;;  %v3368_v14 = vld [vmem:[#allocation2 + $0x244] sm:$0xf]  ;;  %v2569_v38 = vor.u32 %v3366_v27, %v2566_v29  ;;  %v2710_v9 = vld [vmem:[#allocation2 + $0x358] sm:$0xf0]  ;;  %v2686_v27 = vld [vmem:[#allocation2 + $0x328] sm:$0xf0] }
  0x5a   :  { %903 = vmatpush.bf16.msra.mxu1 %v2473_v18  ;;  %872 = vmatmul.bf16.vlgmr.msrb.gmra.mxu2 %v3780_v28  ;;  %v3348_v18 = vld [vmem:[#allocation2 + $0x1a4] sm:$0xf]  ;;  %v3415_v42 = vld [vmem:[%s3973_s4 + $0x38] sm:$0xff] }
  0x5b   :  { %916 = vmatpush.bf16.msra.mxu2 %v2537_v22  ;;  %v2577_v22 = vor.u32 %v3368_v14, %v2574_v15  ;;  %v2497_v30 = vor.u32 %v3348_v18, %v2494_v19  ;;  %v3384_v14 = vld [vmem:[#allocation2 + $0x2c4] sm:$0xf]  ;;  %v2638_v15 = vld [vmem:[#allocation2 + $0x2c8] sm:$0xf0]  ;;  %v3382_v19 = vld [vmem:[#allocation2 + $0x2b4] sm:$0xf] }
  0x5c   :  { %884 = vmatpush.bf16.msrb.mxu3 %v2289_v43  ;;  %v2489_v43 = vor.u32 %v3346_v32, %v2486_v33  ;;  %v2641_v18 = vor.u32 %v3384_v14, %v2638_v15  ;;  %v2614_v32 = vld [vmem:[#allocation2 + $0x298] sm:$0xf0]  ;;  %v3394_v33 = vld [vmem:[#allocation2 + $0x314] sm:$0xf]  ;;  %v3420_v14 = vld [vmem:[%s3973_s4 + $0x60] sm:$0xff] }
  0x5d   :  { %891 = vmatpush.bf16.msra.mxu0 %v2401_v31  ;;  %v2422_v31 = vld [vmem:[#allocation2 + $0x118] sm:$0xf0] }
  0x5e   :  { %904 = vmatpush.bf16.msra.mxu1 %v2465_v35  ;;  %v3312_v35 = vld [vmem:[#allocation2 + $0x84] sm:$0xf] }
  0x5f   :  { %917 = vmatpush.bf16.msra.mxu2 %v2529_v39  ;;  %885 = vmatmul.bf16.vlgmr.msrb.gmra.mxu3 %v3751_v54  ;;  %v3314_v54 = vld [vmem:[#allocation2 + $0x94] sm:$0xf]  ;;  %v2425_v39 = vor.u32 %v3330_v26, %v2422_v31  ;;  %v2353_v51 = vor.u32 %v3312_v35, %v2350_v36  ;;  %v3396_v26 = vld [vmem:[#allocation2 + $0x324] sm:$0xf] }
  0x60   :  { %929 = vmatpush.bf16.msra.mxu3 %v2601_v48  ;;  %v2361_v34 = vor.u32 %v3314_v54, %v2358_v21  ;;  %v2726_v48 = vld [vmem:[#allocation2 + $0x378] sm:$0xf0]  ;;  %v3378_v31 = vld [vmem:[#allocation2 + $0x294] sm:$0xf]  ;;  %v3376_v36 = vld [vmem:[#allocation2 + $0x284] sm:$0xf] }
  0x61   :  { %892 = vmatpush.bf16.msra.mxu0 %v2393_v44  ;;  %v3390_v44 = vld [vmem:[#allocation2 + $0x2f4] sm:$0xf]  ;;  %v2729_v58 = vor.u32 %v3406_v47, %v2726_v48  ;;  %v2694_v54 = vld [vmem:[#allocation2 + $0x338] sm:$0xf0] }
  0x62   :  { %905 = vmatpush.bf16.msra.mxu1 %v2457_v49  ;;  %v3344_v49 = vld [vmem:[#allocation2 + $0x184] sm:$0xf]  ;;  %v2665_v55 = vor.u32 %v3390_v44, %v2662_v46  ;;  %v3413_v44 = vld [vmem:[%s3973_s4 + $0x28] sm:$0xff]  ;;  %v3410_v48 = vld [vmem:[%s3973_s4 + $0x10] sm:$0xff] }
  0x63   :  { %918 = vmatpush.bf16.msra.mxu2 %v2521_v53  ;;  %v2417_v53 = vor.u32 %v3328_v37, %v2414_v40  ;;  %v2481_v62 = vor.u32 %v3344_v49, %v2478_v50  ;;  %v2606_v37 = vld [vmem:[#allocation2 + $0x288] sm:$0xf0]  ;;  %v220_v50 = vld [vmem:[%s3996_s27] sm:$0x3] }
  0x64   :  { %930 = vmatpush.bf16.msra.mxu3 %v2593_v0  ;;  %v2718_v0 = vld [vmem:[#allocation2 + $0x368] sm:$0xf0]  ;;  %v2609_v40 = vor.u32 %v3376_v36, %v2606_v37 }
  0x65   :  { %893 = vmatpush.bf16.msra.mxu0 %v2385_v59  ;;  %v3388_v59 = vld [vmem:[#allocation2 + $0x2e4] sm:$0xf]  ;;  %v2721_v5 = vor.u32 %v3404_v63, %v2718_v0 }
  0x66   :  { %906 = vmatpush.bf16.msra.mxu1 %v2449_v1  ;;  %v2553_v1 = vor.u32 %v3362_v56, %v2550_v57  ;;  %v2657_v2 = vor.u32 %v3388_v59, %v2654_v61  ;;  %v3408_v56 = vld [vmem:[%s3973_s4] sm:$0xff] }
  0x67   :  { %919 = vmatpush.bf16.msra.mxu2 %v2513_v4  ;;  %v2542_v4 = vld [vmem:[#allocation2 + $0x208] sm:$0xf0] }
  0x68   :  { %931 = vmatpush.bf16.msra.mxu3 %v2585_v10  ;;  %v2545_v10 = vor.u32 %v3360_v3, %v2542_v4  ;;  %v3423_v3 = vld [vmem:[%s3973_s4 + $0x78] sm:$0xff] }
  0x69   :  { %894 = vmatpush.bf16.msra.mxu0 %v2377_v8  ;;  %v3402_v8 = vld [vmem:[#allocation2 + $0x354] sm:$0xf] }
  0x6a   :  { %907 = vmatpush.bf16.msra.mxu1 %v2441_v11  ;;  %v2649_v11 = vor.u32 %v3386_v6, %v2646_v7  ;;  %v2713_v12 = vor.u32 %v3402_v8, %v2710_v9  ;;  %v3422_v6 = vld [vmem:[%s3973_s4 + $0x70] sm:$0xff] }
  0x6b   :  { %920 = vmatpush.bf16.msra.mxu2 %v2505_v16  ;;  %v3400_v16 = vld [vmem:[#allocation2 + $0x344] sm:$0xf] }
  0x6c   :  { %932 = vmatpush.bf16.msra.mxu3 %v2577_v22  ;;  %v3380_v22 = vld [vmem:[#allocation2 + $0x2a4] sm:$0xf] }
  0x6d   :  { %895 = vmatpush.bf16.msra.mxu0 %v2369_v20  ;;  %v2630_v20 = vld [vmem:[#allocation2 + $0x2b8] sm:$0xf0] }
  0x6e   :  { %908 = vmatpush.bf16.msra.mxu1 %v2433_v24  ;;  %v2633_v21 = vor.u32 %v3382_v19, %v2630_v20  ;;  %v2622_v24 = vld [vmem:[#allocation2 + $0x2a8] sm:$0xf0]  ;;  %v3418_v19 = vld [vmem:[%s3973_s4 + $0x50] sm:$0xff] }
  0x6f   :  { %921 = vmatpush.bf16.msra.mxu2 %v2497_v30  ;;  %v2625_v29 = vor.u32 %v3380_v22, %v2622_v24  ;;  %v2689_v30 = vor.u32 %v3396_v26, %v2686_v27 }
  0x70   :  { %933 = vmatpush.bf16.msra.mxu3 %v2569_v38  ;;  %v3392_v38 = vld [vmem:[#allocation2 + $0x304] sm:$0xf] }
  0x71   :  { %896 = vmatpush.bf16.msra.mxu0 %v2361_v34  ;;  %v2678_v34 = vld [vmem:[#allocation2 + $0x318] sm:$0xf0] }
  0x72   :  { %909 = vmatpush.bf16.msra.mxu1 %v2425_v39  ;;  %v2681_v35 = vor.u32 %v3394_v33, %v2678_v34  ;;  %v2670_v39 = vld [vmem:[#allocation2 + $0x308] sm:$0xf0] }
  0x73   :  { %922 = vmatpush.bf16.msra.mxu2 %v2489_v43  ;;  %v2673_v41 = vor.u32 %v3392_v38, %v2670_v39  ;;  %v3414_v43 = vld [vmem:[%s3973_s4 + $0x30] sm:$0xff] }
  0x74   :  { %934 = vmatpush.bf16.msra.mxu3 %v2561_v52 }
  0x75   :  { %897 = vmatpush.bf16.msra.mxu0 %v2353_v51  ;;  %v3409_v51 = vld [vmem:[%s3973_s4 + $0x8] sm:$0xff] }
  0x76   :  { %910 = vmatpush.bf16.msra.mxu1 %v2417_v53 }
  0x77   :  { %923 = vmatpush.bf16.msra.mxu2 %v2481_v62 }
  0x78   :  { %898 = vmatmul.bf16.vlgmr.msra.gmra.mxu0 %v3756_v60  ;;  %935 = vmatpush.bf16.msra.mxu3 %v2553_v1  ;;  %v2705_v60 = vor.u32 %v3400_v16, %v2702_v17 }
  0x79   :  { %942 = vmatpush.bf16.msrb.mxu0 %v2665_v55  ;;  %911 = vmatmul.bf16.vlgmr.msra.gmra.mxu1 %v3746_v45  ;;  %v3398_v45 = vld [vmem:[#allocation2 + $0x334] sm:$0xf]  ;;  %v222_v55 = vperm.slane %v220_v50, 0 }
  0x7a   :  { %955 = vmatpush.bf16.msrb.mxu1 %v2729_v58  ;;  %924 = vmatmul.bf16.vlgmr.msra.gmra.mxu2 %v3764_v13  ;;  %v2697_v13 = vor.u32 %v3398_v45, %v2694_v54  ;;  %v3417_v54 = vld [vmem:[%s3973_s4 + $0x48] sm:$0xff] }
  0x7b   :  { %1104 = vmatpush.bf16.msrb.mxu2 %v3415_v42 }
  0x7c   :  { %936 = vmatpush.bf16.msra.mxu3 %v2545_v10 }
  0x7d   :  { %943 = vmatpush.bf16.msrb.mxu0 %v2657_v2 }
  0x7e   :  { %956 = vmatpush.bf16.msrb.mxu1 %v2721_v5 }
  0x7f   :  { %937 = vmatmul.bf16.vlgmr.msra.gmra.mxu3 %v3776_v23  ;;  %v2617_v23 = vor.u32 %v3378_v31, %v2614_v32  ;;  %1105 = vmatpush.bf16.msrb.mxu2 %v3414_v43 }
  0x80   :  { %1117 = vmatpush.bf16.msrb.mxu3 %v3423_v3 }
  0x81   :  { %944 = vmatpush.bf16.msrb.mxu0 %v2649_v11  ;;  %v3421_v11 = vld [vmem:[%s3973_s4 + $0x68] sm:$0xff] }
  0x82   :  { %957 = vmatpush.bf16.msrb.mxu1 %v2713_v12 }
  0x83   :  { %1106 = vmatpush.bf16.msrb.mxu2 %v3413_v44 }
  0x84   :  { %1118 = vmatpush.bf16.msrb.mxu3 %v3422_v6 }
  0x85   :  { %945 = vmatpush.bf16.msrb.mxu0 %v2641_v18  ;;  %v3419_v18 = vld [vmem:[%s3973_s4 + $0x58] sm:$0xff] }
  0x86   :  { %958 = vmatpush.bf16.msrb.mxu1 %v2705_v60 }
  0x88   :  { %1119 = vmatpush.bf16.msrb.mxu3 %v3421_v11 }
  0x89   :  { %946 = vmatpush.bf16.msrb.mxu0 %v2633_v21  ;;  %v3416_v21 = vld [vmem:[%s3973_s4 + $0x40] sm:$0xff] }
  0x8a   :  { %959 = vmatpush.bf16.msrb.mxu1 %v2697_v13  ;;  %v223_v13 = vperm.slane %v220_v50, 1 }
  0x8c   :  { %1120 = vmatpush.bf16.msrb.mxu3 %v3420_v14 }
  0x8d   :  { %947 = vmatpush.bf16.msrb.mxu0 %v2625_v29 }
  0x8e   :  { %960 = vmatpush.bf16.msrb.mxu1 %v2689_v30 }
  0x90   :  { %1121 = vmatpush.bf16.msrb.mxu3 %v3419_v18 }
  0x91   :  { %948 = vmatpush.bf16.msrb.mxu0 %v2617_v23 }
  0x92   :  { %961 = vmatpush.bf16.msrb.mxu1 %v2681_v35 }
  0x94   :  { %1122 = vmatpush.bf16.msrb.mxu3 %v3418_v19 }
  0x95   :  { %949 = vmatpush.bf16.msrb.mxu0 %v2609_v40 }
  0x96   :  { %962 = vmatpush.bf16.msrb.mxu1 %v2673_v41 }
  0x98   :  { %950 = vmatmul.bf16.vlgmr.msrb.gmra.mxu0 %v3778_v25  ;;  %v3412_v25 = vld [vmem:[%s3973_s4 + $0x20] sm:$0xff]  ;;  %1123 = vmatpush.bf16.msrb.mxu3 %v3417_v54  ;;  %v3435_v54 = vld [vmem:[%s3983_s14 + $0x24] sm:$0xf0] }
  0x99   :  { %963 = vmatmul.bf16.vlgmr.msrb.gmra.mxu1 %v3780_v28  ;;  %1107 = vmatpush.bf16.msrb.mxu2 %v3412_v25  ;;  %v3411_v28 = vld [vmem:[%s3973_s4 + $0x18] sm:$0xff]  ;;  %v3426_v25 = vld [vmem:[%s3975_s6 + $0x10] sm:$0xff] }
  0x9a   :  { %1169 = vmatpush.bf16.msra.mxu0 %v3426_v25 }
  0x9c   :  { %1124 = vmatpush.bf16.msrb.mxu3 %v3416_v21  ;;  %v3434_v21 = vld [vmem:[%s3983_s14 + $0x24] sm:$0xf] }
  0x9d   :  { %1108 = vmatpush.bf16.msrb.mxu2 %v3411_v28  ;;  %v3425_v28 = vld [vmem:[%s3975_s6 + $0x8] sm:$0xff] }
  0x9e   :  { %1170 = vmatpush.bf16.msra.mxu0 %v3425_v28 }
  0xa1   :  { %1109 = vmatpush.bf16.msrb.mxu2 %v3410_v48 }
  0xa5   :  { %1110 = vmatpush.bf16.msrb.mxu2 %v3409_v51 }
  0xa9   :  { %1111 = vmatpush.bf16.msrb.mxu2 %v3408_v56  ;;  %v3427_v56 = vld [vmem:[%s3977_s8] sm:$0xff] }
  0xb5   :  { %v795_v46 = vpop.f32.mrf.mxu0 }
  0xb6   :  { %v808_v47 = vpop.f32.mrf.mxu1  ;;  %v796_v58 = vadd.f32 %v795_v46, %v222_v55  ;;  %v3424_v46 = vld [vmem:[%s3975_s6] sm:$0xff]  ;;  %v3428_v55 = vld [vmem:[%s3977_s8 + $0x8] sm:$0xff] }
  0xb7   :  { %1171 = vmatpush.bf16.msra.mxu0 %v3424_v46  ;;  %1209 = vmatpush.bf16.msra.mxu1 %v3428_v55  ;;  %v3541_v46 = vld [vmem:[#allocation4 + $0x34c] sm:$0xf] }
  0xb8   :  { %v809_v61 = vadd.f32 %v808_v47, %v796_v58  ;;  %v3555_v47 = vld [vmem:[%s3974_s5] ss:$0 sm:$0xff] }
  0xbb   :  { %1210 = vmatpush.bf16.msra.mxu1 %v3427_v56  ;;  %v3478_v56 = vld [vmem:[#allocation4 + $0x154] sm:$0xf] }
  0xbd   :  { %v821_v49 = vpop.f32.mrf.mxu2  ;;  %v797_v52 = vpop.f32.mrf.mxu0 }
  0xbe   :  { %v810_v53 = vpop.f32.mrf.mxu1  ;;  %v822_v63 = vadd.f32 %v821_v49, %v809_v61 }
  0xc2   :  { %v834_v57 = vpop.f32.mrf.mxu3 }
  0xc3   :  { %v835_v0 = vadd.f32 %v834_v57, %v822_v63  ;;  %v3556_v57 = vld [vmem:[%s3976_s7] ss:$0 sm:$0xff]  ;;  %s3636_s7 = smov 126  }
  0xc5   :  { %v823_v59 = vpop.f32.mrf.mxu2 }
  0xca   :  { %v836_v62 = vpop.f32.mrf.mxu3 }
  0xd5   :  { %v847_v1 = vpop.f32.mrf.mxu0 }
  0xd6   :  { %v860_v2 = vpop.f32.mrf.mxu1  ;;  %v848_v4 = vadd.f32 %v847_v1, %v835_v0  ;;  %v3557_v0 = vld [vmem:[%s3978_s9] ss:$0 sm:$0xff] }
  0xd8   :  { %v861_v5 = vadd.f32 %v860_v2, %v848_v4 }
  0xdd   :  { %v873_v7 = vpop.f32.mrf.mxu2  ;;  %v849_v9 = vpop.f32.mrf.mxu0 }
  0xde   :  { %v874_v8 = vadd.f32 %v873_v7, %v861_v5  ;;  %v862_v10 = vpop.f32.mrf.mxu1  ;;  %v1227_v7 = vld [vmem:[%s3979_s10] sm:$0x1] }
  0xdf   :  { %v1219_v9 = vld [vmem:[%s3997_s30] sm:$0xff] }
  0xe0   :  { %3560 = vtanh.f32 %v874_v8  ;;  %v1238_v8 = vsel %vm1236_vm3, %v1227_v7, 0  ;;  %v3216_v7 = vld [vmem:[#allocation4 + $0x2f4] sm:$0xf0] }
  0xe1   :  { %1247 = vmatpush.bf16.msra.mxu2 %v1238_v8 }
  0xe2   :  { %v886_v12 = vpop.f32.mrf.mxu3 }
  0xe3   :  { %v887_v27 = vadd.f32 %v886_v12, %v223_v13 }
  0xe5   :  { %v875_v15 = vpop.f32.mrf.mxu2 }
  0xe6   :  { %v3561_v16 = vpop.eup %3560  ;;  %v3429_v15 = vld [vmem:[%s3981_s12] sm:$0xff] }
  0xe7   :  { %v970_v17 = vpack.c.bf16 %v3561_v16, %v3561_v16  ;;  %1278 = vmatpush.bf16.msra.mxu3 %v3429_v15  ;;  %v3558_v16 = vld [vmem:[%s3980_s11] ss:$0 sm:$0xff]  ;;  %v3523_v15 = vld [vmem:[#allocation4 + $0x2b8] sm:$0xf0] }
  0xe9   :  { %1112 = vmatmul.bf16.vlgmr.msrb.gmra.mxu2 %v970_v17 }
  0xea   :  { %v888_v60 = vpop.f32.mrf.mxu3 }
  0xf5   :  { %v899_v20 = vpop.f32.mrf.mxu0 }
  0xf6   :  { %v912_v45 = vpop.f32.mrf.mxu1  ;;  %v900_v30 = vadd.f32 %v899_v20, %v887_v27  ;;  %v3433_v27 = vld [vmem:[%s3983_s14 + $0x14] sm:$0xf0] }
  0xf8   :  { %v913_v32 = vadd.f32 %v912_v45, %v900_v30  ;;  %v2840_v45 = vld [vmem:[%s3983_s14 + $0x20] sm:$0xf] }
  0xf9   :  { %v2841_v13 = vor.u32 %v3435_v54, %v2840_v45  ;;  %v2934_v54 = vld [vmem:[#allocation4 + $0xa8] sm:$0xf] }
  0xfb   :  { %1336 = vmatpush.bf16.msrb.mxu0 %v2841_v13  ;;  %v3158_v13 = vld [vmem:[#allocation4 + $0x268] sm:$0xf] }
  0xfd   :  { %v901_v22 = vpop.f32.mrf.mxu0  ;;  %v925_v24 = vpop.f32.mrf.mxu2 }
  0xfe   :  { %v914_v26 = vpop.f32.mrf.mxu1  ;;  %v926_v34 = vadd.f32 %v925_v24, %v913_v32  ;;  %v2842_v22 = vld [vmem:[%s3983_s14 + $0x28] sm:$0xf0] }
  0xff   :  { %v2845_v24 = vor.u32 %v3434_v21, %v2842_v22  ;;  %v2832_v26 = vld [vmem:[%s3983_s14 + $0x10] sm:$0xf]  ;;  %v3460_v21 = vld [vmem:[#allocation4 + $0xc0] sm:$0xf0] }
 0x100   :  { %v2833_v30 = vor.u32 %v3433_v27, %v2832_v26  ;;  %v3457_v26 = vld [vmem:[#allocation4 + $0xac] sm:$0xf]  ;;  %v2936_v27 = vld [vmem:[#allocation4 + $0xc4] sm:$0xf0] }
 0x101   :  { %1349 = vmatpush.bf16.msrb.mxu1 %v2845_v24  ;;  %v3516_v24 = vld [vmem:[#allocation4 + $0x280] sm:$0xf0] }
 0x102   :  { %v938_v29 = vpop.f32.mrf.mxu3  ;;  %1337 = vmatpush.bf16.msrb.mxu0 %v2833_v30  ;;  %v3160_v30 = vld [vmem:[#allocation4 + $0x284] sm:$0xf0] }
 0x103   :  { %v939_v23 = vadd.f32 %v938_v29, %v926_v34  ;;  %v3432_v29 = vld [vmem:[%s3983_s14 + $0x14] sm:$0xf]  ;;  %v3431_v34 = vld [vmem:[%s3983_s14 + $0x4] sm:$0xf0] }
 0x105   :  { %v927_v31 = vpop.f32.mrf.mxu2 }
 0x106   :  { %v2834_v31 = vld [vmem:[%s3983_s14 + $0x18] sm:$0xf0] }
 0x107   :  { %v2837_v32 = vor.u32 %v3432_v29, %v2834_v31  ;;  %v3513_v29 = vld [vmem:[#allocation4 + $0x26c] sm:$0xf]  ;;  %v3559_v31 = vld [vmem:[%s3982_s13] ss:$0 sm:$0xff] }
 0x109   :  { %1350 = vmatpush.bf16.msrb.mxu1 %v2837_v32  ;;  %v2935_v32 = vor.u32 %v3460_v21, %v2934_v54 }
 0x10a   :  { %v940_v33 = vpop.f32.mrf.mxu3 }
 0x10b   :  { %v2824_v33 = vld [vmem:[%s3983_s14] sm:$0xf] }
 0x115   :  { %v951_v35 = vpop.f32.mrf.mxu0 }
 0x116   :  { %v952_v36 = vadd.f32 %v951_v35, %v939_v23  ;;  %v964_v37 = vpop.f32.mrf.mxu1  ;;  %v3430_v23 = vld [vmem:[%s3983_s14 + $0x4] sm:$0xf]  ;;  %v2825_v35 = vor.u32 %v3431_v34, %v2824_v33  ;;  %v3159_v33 = vor.u32 %v3516_v24, %v3158_v13  ;;  %v2939_v34 = vor.u32 %v3457_v26, %v2936_v27  ;;  %v3026_v13 = vld [vmem:[#allocation4 + $0x158] sm:$0xf]  ;;  %v3538_v27 = vld [vmem:[#allocation4 + $0x330] sm:$0xf0] }
 0x117   :  { %v3250_v24 = vld [vmem:[#allocation4 + $0x318] sm:$0xf] }
 0x118   :  { %v965_v38 = vadd.f32 %v964_v37, %v952_v36  ;;  %v2826_v36 = vld [vmem:[%s3983_s14 + $0x8] sm:$0xf0]  ;;  %1338 = vmatpush.bf16.msrb.mxu0 %v2825_v35 }
 0x119   :  { %v2829_v37 = vor.u32 %v3430_v23, %v2826_v36  ;;  %v2906_v23 = vld [vmem:[#allocation4 + $0x70] sm:$0xf]  ;;  %v3453_v35 = vld [vmem:[#allocation4 + $0x88] sm:$0xf0] }
 0x11a   :  { %3562 = vtanh.f32 %v965_v38  ;;  %v3046_v38 = vld [vmem:[#allocation4 + $0x188] sm:$0xf]  ;;  %v3130_v36 = vld [vmem:[#allocation4 + $0x230] sm:$0xf] }
 0x11b   :  { %1351 = vmatpush.bf16.msrb.mxu1 %v2829_v37  ;;  %v3163_v37 = vor.u32 %v3513_v29, %v3160_v30  ;;  %v3479_v29 = vld [vmem:[#allocation4 + $0x15c] sm:$0xf]  ;;  %v3028_v30 = vld [vmem:[#allocation4 + $0x174] sm:$0xf0] }
 0x11d   :  { %v953_v39 = vpop.f32.mrf.mxu0 }
 0x11e   :  { %v966_v40 = vpop.f32.mrf.mxu1  ;;  %v3488_v39 = vld [vmem:[#allocation4 + $0x1a0] sm:$0xf0] }
 0x11f   :  { %v3270_v40 = vld [vmem:[#allocation4 + $0x348] sm:$0xf] }
 0x120   :  { %v3563_v41 = vpop.eup %3562 }
 0x121   :  { %v971_v42 = vpack.c.bf16 %v3563_v41, %v3563_v41  ;;  %v3047_v41 = vor.u32 %v3488_v39, %v3046_v38  ;;  %v3509_v38 = vld [vmem:[#allocation4 + $0x248] sm:$0xf0]  ;;  %v3450_v39 = vld [vmem:[#allocation4 + $0x74] sm:$0xf] }
 0x123   :  { %1125 = vmatmul.bf16.vlgmr.msrb.gmra.mxu3 %v971_v42  ;;  %v3544_v42 = vld [vmem:[#allocation4 + $0x360] sm:$0xf0]  ;;  %2081 = vmatpush.bf16.msrb.mxu2 %v3047_v41  ;;  %v3506_v41 = vld [vmem:[#allocation4 + $0x234] sm:$0xf] }
 0x124   :  { %v3271_v25 = vor.u32 %v3544_v42, %v3270_v40  ;;  %v2908_v40 = vld [vmem:[#allocation4 + $0x8c] sm:$0xf0] }
 0x125   :  { %v3132_v42 = vld [vmem:[#allocation4 + $0x24c] sm:$0xf0] }
 0x126   :  { %2094 = vmatpush.bf16.msrb.mxu3 %v3271_v25  ;;  %v3131_v25 = vor.u32 %v3509_v38, %v3130_v36  ;;  %v3475_v36 = vld [vmem:[#allocation4 + $0x138] sm:$0xf0] }
 0x16c   :  { %v1113_v43 = vpop.f32.mrf.mxu2 }
 0x16d   :  { %v1114_v48 = vadd.f32 %v3555_v47, %v1113_v43  ;;  %v3485_v43 = vld [vmem:[#allocation4 + $0x18c] sm:$0xf]  ;;  %v3272_v47 = vld [vmem:[#allocation4 + $0x364] sm:$0xf0] }
 0x174   :  { %v1115_v44 = vpop.f32.mrf.mxu2 }
 0x175   :  { %v3048_v44 = vld [vmem:[#allocation4 + $0x1a4] sm:$0xf0] }
 0x176   :  { %v3051_v28 = vor.u32 %v3485_v43, %v3048_v44  ;;  %v2907_v43 = vor.u32 %v3453_v35, %v2906_v23  ;;  %v3031_v23 = vor.u32 %v3479_v29, %v3028_v30  ;;  %v2998_v35 = vld [vmem:[#allocation4 + $0x120] sm:$0xf]  ;;  %v3500_v30 = vld [vmem:[#allocation4 + $0x204] sm:$0xf] }
 0x1a6   :  { %v1126_v49 = vpop.f32.mrf.mxu3 }
 0x1a7   :  { %v1127_v50 = vadd.f32 %v1126_v49, %v1114_v48  ;;  %v3018_v48 = vld [vmem:[#allocation4 + $0x150] sm:$0xf]  ;;  %v3275_v49 = vor.u32 %v3541_v46, %v3272_v47  ;;  %v2878_v46 = vld [vmem:[#allocation4 + $0x38] sm:$0xf]  ;;  %v3446_v47 = vld [vmem:[#allocation4 + $0x50] sm:$0xf0] }
 0x1a9   :  { %3564 = vtanh.f32 %v1127_v50  ;;  %v3481_v50 = vld [vmem:[#allocation4 + $0x168] sm:$0xf0] }
 0x1ae   :  { %v1128_v51 = vpop.f32.mrf.mxu3 }
 0x1af   :  { %v3565_v52 = vpop.eup %3564  ;;  %v3242_v51 = vld [vmem:[#allocation4 + $0x310] sm:$0xf] }
 0x1b0   :  { %v1131_v53 = vpack.c.bf16 %v3565_v52, %v3565_v52  ;;  %v3537_v52 = vld [vmem:[#allocation4 + $0x328] sm:$0xf0] }
 0x1b1   :  { %v3243_v55 = vor.u32 %v3537_v52, %v3242_v51  ;;  %v3502_v51 = vld [vmem:[#allocation4 + $0x210] sm:$0xf0]  ;;  %v3443_v52 = vld [vmem:[#allocation4 + $0x3c] sm:$0xf] }
 0x1b2   :  { %2806 = vmatmul.msk.bf16.vlgmr.msra.gmra.mxu0 %vm1160_vm0, %v1131_v53  ;;  %v3019_v53 = vor.u32 %v3481_v50, %v3018_v48  ;;  %v3102_v48 = vld [vmem:[#allocation4 + $0x1f8] sm:$0xf]  ;;  %v3135_v50 = vor.u32 %v3506_v41, %v3132_v42  ;;  %v3000_v41 = vld [vmem:[#allocation4 + $0x13c] sm:$0xf0]  ;;  %v3528_v42 = vld [vmem:[#allocation4 + $0x2e4] sm:$0xf] }
 0x1b3   :  { %2107 = vmatpush.bf16.msra.mxu0 %v3051_v28  ;;  %2095 = vmatpush.bf16.msrb.mxu3 %v3243_v55  ;;  %v2911_v28 = vor.u32 %v3450_v39, %v2908_v40  ;;  %v3499_v55 = vld [vmem:[#allocation4 + $0x1fc] sm:$0xf]  ;;  %v3472_v40 = vld [vmem:[#allocation4 + $0x124] sm:$0xf] }
 0x1b4   :  { %2082 = vmatpush.bf16.msrb.mxu2 %v3019_v53  ;;  %v2880_v53 = vld [vmem:[#allocation4 + $0x54] sm:$0xf0]  ;;  %v3531_v39 = vld [vmem:[#allocation4 + $0x2f8] sm:$0xf0] }
 0x22f   :  { %v1173_v58 = vpop.f32.mrf.mxu0 }
 0x230   :  { %v1174_v59 = vadd.f32 %v3556_v57, %v1173_v58  ;;  %v3020_v57 = vld [vmem:[#allocation4 + $0x16c] sm:$0xf0]  ;;  %v3534_v58 = vld [vmem:[#allocation4 + $0x314] sm:$0xf] }
 0x232   :  { %3566 = vtanh.f32 %v1174_v59  ;;  %v3023_v59 = vor.u32 %v3478_v56, %v3020_v57  ;;  %v3104_v56 = vld [vmem:[#allocation4 + $0x214] sm:$0xf0]  ;;  %v2879_v57 = vor.u32 %v3446_v47, %v2878_v46  ;;  %v2970_v46 = vld [vmem:[#allocation4 + $0xe8] sm:$0xf]  ;;  %v3468_v47 = vld [vmem:[#allocation4 + $0x100] sm:$0xf0] }
 0x234   :  { %2108 = vmatpush.bf16.msra.mxu0 %v3023_v59  ;;  %v2883_v59 = vor.u32 %v3443_v52, %v2880_v53  ;;  %v2972_v52 = vld [vmem:[#allocation4 + $0x104] sm:$0xf0]  ;;  %v3521_v53 = vld [vmem:[#allocation4 + $0x2ac] sm:$0xf] }
 0x237   :  { %v1175_v61 = vpop.f32.mrf.mxu0 }
 0x238   :  { %v3567_v62 = vpop.eup %3566  ;;  %v3244_v61 = vld [vmem:[#allocation4 + $0x32c] sm:$0xf0] }
 0x239   :  { %v1178_v63 = vpack.c.bf16 %v3567_v62, %v3567_v62  ;;  %v2990_v62 = vld [vmem:[#allocation4 + $0x118] sm:$0xf] }
 0x23b   :  { %2815 = vmatmul.msk.bf16.vlgmr.msra.gmra.mxu1 %vm1199_vm1, %v1178_v63  ;;  %v3474_v63 = vld [vmem:[#allocation4 + $0x130] sm:$0xf0] }
 0x23c   :  { %2120 = vmatpush.bf16.msra.mxu1 %v3275_v49 }
 0x2b8   :  { %v1212_v1 = vpop.f32.mrf.mxu1 }
 0x2b9   :  { %v1213_v2 = vadd.f32 %v3557_v0, %v1212_v1  ;;  %v3247_v0 = vor.u32 %v3534_v58, %v3244_v61  ;;  %v3214_v1 = vld [vmem:[#allocation4 + $0x2d8] sm:$0xf]  ;;  %v3103_v58 = vor.u32 %v3502_v51, %v3102_v48  ;;  %v2850_v61 = vld [vmem:[#allocation4] sm:$0xf]  ;;  %v3194_v48 = vld [vmem:[#allocation4 + $0x2a8] sm:$0xf] }
 0x2ba   :  { %v3465_v51 = vld [vmem:[#allocation4 + $0xec] sm:$0xf] }
 0x2bb   :  { %v1216_v3 = vmul.f32 0.5, %v1213_v2  ;;  %2264 = vst.msk [vmem:[%s3987_s18] sm:$0xff] %vm2263_vm2, %v1213_v2  ;;  %2121 = vmatpush.bf16.msra.mxu1 %v3247_v0  ;;  %v3074_v0 = vld [vmem:[#allocation4 + $0x1c0] sm:$0xf] }
 0x2bd   :  { %v1217_v4 = vmul.f32 1.442695, %v1216_v3  ;;  %v3471_v3 = vld [vmem:[#allocation4 + $0x11c] sm:$0xf] }
 0x2bf   :  { %3568 = vpow2.f32 %v1217_v4  ;;  %v2991_v4 = vor.u32 %v3474_v63, %v2990_v62  ;;  %v3439_v62 = vld [vmem:[#allocation4 + $0x18] sm:$0xf0]  ;;  %v3107_v63 = vor.u32 %v3499_v55, %v3104_v56  ;;  %v3196_v55 = vld [vmem:[#allocation4 + $0x2c4] sm:$0xf0]  ;;  %v2971_v56 = vor.u32 %v3468_v47, %v2970_v46 }
 0x2c0   :  { %v1214_v5 = vpop.f32.mrf.mxu1 }
 0x2c1   :  { %v2992_v5 = vld [vmem:[#allocation4 + $0x134] sm:$0xf0]  ;;  %2083 = vmatpush.bf16.msrb.mxu2 %v2991_v4  ;;  %v3492_v4 = vld [vmem:[#allocation4 + $0x1c4] sm:$0xf] }
 0x2c5   :  { %v3569_v6 = vpop.eup %3568 }
 0x2c6   :  { %1221 = vrot.lane.b32.xlu0 %v3569_v6, %s3636_s7  ;;  %v3527_v6 = vld [vmem:[#allocation4 + $0x2dc] sm:$0xf] }
 0x338   :  { %v1222_v10 = vpop.permute.xlu0 %1221 }
 0x339   :  { %v1224_v11 = vmul.f32 %v1222_v10, %v1219_v9  ;;  %v2995_v9 = vor.u32 %v3471_v3, %v2992_v5  ;;  %v2962_v10 = vld [vmem:[#allocation4 + $0xe0] sm:$0xf] }
 0x33a   :  { %v2852_v3 = vld [vmem:[#allocation4 + $0x1c] sm:$0xf0] }
 0x33b   :  { %v1225_v12 = vadd.f32 %v1224_v11, %v1213_v2  ;;  %v3530_v2 = vld [vmem:[#allocation4 + $0x2f0] sm:$0xf0]  ;;  %v3467_v11 = vld [vmem:[#allocation4 + $0xf8] sm:$0xf0]  ;;  %2109 = vmatpush.bf16.msra.mxu0 %v2995_v9  ;;  %v3076_v5 = vld [vmem:[#allocation4 + $0x1dc] sm:$0xf0] }
 0x33c   :  { %v3215_v8 = vor.u32 %v3530_v2, %v3214_v1  ;;  %v3495_v1 = vld [vmem:[#allocation4 + $0x1d8] sm:$0xf0]  ;;  %v3436_v2 = vld [vmem:[#allocation4 + $0x4] sm:$0xf]  ;;  %v3278_v9 = vld [vmem:[#allocation4 + $0x350] sm:$0xf] }
 0x33d   :  { %v1226_v14 = vpack.c.bf16 %v1225_v12, %v1225_v12  ;;  %v3186_v12 = vld [vmem:[#allocation4 + $0x2a0] sm:$0xf] }
 0x33e   :  { %2096 = vmatpush.bf16.msrb.mxu3 %v3215_v8  ;;  %v3489_v8 = vld [vmem:[#allocation4 + $0x1a8] sm:$0xf0] }
 0x33f   :  { %2816 = vmatmul.msk.bf16.vlgmr.msra.gmra.mxu2 %vm1232_vm4, %v1226_v14  ;;  %v3219_v14 = vor.u32 %v3527_v6, %v3216_v7  ;;  %v2851_v6 = vor.u32 %v3439_v62, %v2850_v61  ;;  %v3054_v7 = vld [vmem:[#allocation4 + $0x190] sm:$0xf]  ;;  %v3461_v61 = vld [vmem:[#allocation4 + $0xc8] sm:$0xf0]  ;;  %v3199_v62 = vor.u32 %v3521_v53, %v3196_v55  ;;  %v3546_v53 = vld [vmem:[#allocation4 + $0x370] sm:$0xf0] }
 0x340   :  { %v3487_v55 = vld [vmem:[#allocation4 + $0x19c] sm:$0xf] }
 0x341   :  { %2122 = vmatpush.bf16.msra.mxu1 %v3219_v14  ;;  %v3056_v14 = vld [vmem:[#allocation4 + $0x1ac] sm:$0xf0] }
 0x3c2   :  { %v1249_v17 = vpop.f32.mrf.mxu2 }
 0x3c3   :  { %v1250_v18 = vadd.f32 %v3558_v16, %v1249_v17  ;;  %v3464_v16 = vld [vmem:[#allocation4 + $0xe4] sm:$0xf]  ;;  %v2964_v17 = vld [vmem:[#allocation4 + $0xfc] sm:$0xf0] }
 0x3c4   :  { %v2967_v45 = vor.u32 %v3464_v16, %v2964_v17  ;;  %v3075_v16 = vor.u32 %v3495_v1, %v3074_v0  ;;  %v2855_v17 = vor.u32 %v3436_v2, %v2852_v3  ;;  %v3517_v0 = vld [vmem:[#allocation4 + $0x288] sm:$0xf0]  ;;  %v3458_v3 = vld [vmem:[#allocation4 + $0xb4] sm:$0xf] }
 0x3c5   :  { %3570 = vtanh.f32 %v1250_v18  ;;  %v3520_v18 = vld [vmem:[#allocation4 + $0x2a4] sm:$0xf] }
 0x3c6   :  { %2110 = vmatpush.bf16.msra.mxu0 %v2967_v45  ;;  %v3055_v45 = vor.u32 %v3489_v8, %v3054_v7  ;;  %v3168_v7 = vld [vmem:[#allocation4 + $0x28c] sm:$0xf0] }
 0x3ca   :  { %v1251_v60 = vpop.f32.mrf.mxu2  ;;  %2111 = vmatpush.bf16.msra.mxu0 %v2939_v34  ;;  %v3251_v34 = vor.u32 %v3538_v27, %v3250_v24  ;;  %v3444_v24 = vld [vmem:[#allocation4 + $0x44] sm:$0xf] }
 0x3cb   :  { %v3571_v19 = vpop.eup %3570  ;;  %v3188_v60 = vld [vmem:[#allocation4 + $0x2bc] sm:$0xf0] }
 0x3cc   :  { %v1254_v20 = vpack.c.bf16 %v3571_v19, %v3571_v19  ;;  %v2963_v19 = vor.u32 %v3467_v11, %v2962_v10  ;;  %v3191_v22 = vor.u32 %v3520_v18, %v3188_v60  ;;  %v3545_v11 = vld [vmem:[#allocation4 + $0x368] sm:$0xf0]  ;;  %v3542_v18 = vld [vmem:[#allocation4 + $0x354] sm:$0xf]  ;;  %v3280_v60 = vld [vmem:[#allocation4 + $0x36c] sm:$0xf0] }
 0x3cd   :  { %v3279_v54 = vor.u32 %v3545_v11, %v3278_v9  ;;  %v3283_v26 = vor.u32 %v3542_v18, %v3280_v60  ;;  %v2914_v9 = vld [vmem:[#allocation4 + $0x78] sm:$0xf]  ;;  %v3507_v60 = vld [vmem:[#allocation4 + $0x23c] sm:$0xf] }
 0x3ce   :  { %2821 = vmatmul.msk.bf16.vlgmr.msra.gmra.mxu3 %vm1267_vm5, %v1254_v20  ;;  %v3187_v20 = vor.u32 %v3523_v15, %v3186_v12  ;;  %2084 = vmatpush.bf16.msrb.mxu2 %v2963_v19  ;;  %v3486_v12 = vld [vmem:[#allocation4 + $0x194] sm:$0xf]  ;;  %v3138_v11 = vld [vmem:[#allocation4 + $0x238] sm:$0xf] }
 0x3cf   :  { %2123 = vmatpush.bf16.msra.mxu1 %v3191_v22  ;;  %2112 = vmatpush.bf16.msra.mxu0 %v2911_v28  ;;  %v3059_v21 = vor.u32 %v3486_v12, %v3056_v14  ;;  %v3482_v22 = vld [vmem:[#allocation4 + $0x170] sm:$0xf0]  ;;  %v3003_v28 = vor.u32 %v3472_v40, %v3000_v41  ;;  %v3493_v41 = vld [vmem:[#allocation4 + $0x1cc] sm:$0xf] }
 0x3d0   :  { %2097 = vmatpush.bf16.msrb.mxu3 %v3187_v20  ;;  %v3079_v20 = vor.u32 %v3492_v4, %v3076_v5  ;;  %v2944_v4 = vld [vmem:[#allocation4 + $0xcc] sm:$0xf0]  ;;  %v3514_v5 = vld [vmem:[#allocation4 + $0x274] sm:$0xf] }
 0x3d1   :  { %v3171_v8 = vor.u32 %v3514_v5, %v3168_v7  ;;  %v3510_v14 = vld [vmem:[#allocation4 + $0x250] sm:$0xf0] }
 0x3d2   :  { %2085 = vmatpush.bf16.msrb.mxu2 %v2935_v32  ;;  %v3252_v32 = vld [vmem:[#allocation4 + $0x334] sm:$0xf0] }
 0x3d3   :  { %2124 = vmatpush.bf16.msra.mxu1 %v3163_v37  ;;  %2113 = vmatpush.bf16.msra.mxu0 %v2883_v59  ;;  %v3222_v37 = vld [vmem:[#allocation4 + $0x2e0] sm:$0xf]  ;;  %v2942_v59 = vld [vmem:[#allocation4 + $0xb0] sm:$0xf] }
 0x3d4   :  { %2098 = vmatpush.bf16.msrb.mxu3 %v3159_v33  ;;  %v3027_v33 = vor.u32 %v3482_v22, %v3026_v13  ;;  %v2943_v1 = vor.u32 %v3461_v61, %v2942_v59  ;;  %v3503_v22 = vld [vmem:[#allocation4 + $0x218] sm:$0xf0]  ;;  %v3288_v61 = vld [vmem:[#allocation4 + $0x374] sm:$0xf0] }
 0x3d5   :  { %v3543_v59 = vld [vmem:[#allocation4 + $0x35c] sm:$0xf] }
 0x3d6   :  { %2086 = vmatpush.bf16.msrb.mxu2 %v2907_v43  ;;  %v3224_v43 = vld [vmem:[#allocation4 + $0x2fc] sm:$0xf0]  ;;  %v3291_v7 = vor.u32 %v3543_v59, %v3288_v61  ;;  %v3508_v59 = vld [vmem:[#allocation4 + $0x244] sm:$0xf] }
 0x3d7   :  { %2125 = vmatpush.bf16.msra.mxu1 %v3135_v50  ;;  %2114 = vmatpush.bf16.msra.mxu0 %v2855_v17  ;;  %v3524_v50 = vld [vmem:[#allocation4 + $0x2c0] sm:$0xf0]  ;;  %v3139_v17 = vor.u32 %v3510_v14, %v3138_v11  ;;  %v3036_v11 = vld [vmem:[#allocation4 + $0x17c] sm:$0xf0] }
 0x3d8   :  { %2099 = vmatpush.bf16.msrb.mxu3 %v3131_v25  ;;  %v3223_v25 = vor.u32 %v3531_v39, %v3222_v37  ;;  %v3437_v37 = vld [vmem:[#allocation4 + $0xc] sm:$0xf]  ;;  %v3260_v14 = vld [vmem:[#allocation4 + $0x33c] sm:$0xf0] }
 0x3d9   :  { %v3148_v61 = vld [vmem:[#allocation4 + $0x25c] sm:$0xf0] }
 0x3da   :  { %2087 = vmatpush.bf16.msrb.mxu2 %v2879_v57  ;;  %v3195_v57 = vor.u32 %v3524_v50, %v3194_v48  ;;  %v3062_v50 = vld [vmem:[#allocation4 + $0x198] sm:$0xf] }
 0x3db   :  { %2126 = vmatpush.bf16.msra.mxu1 %v3107_v63  ;;  %v3166_v63 = vld [vmem:[#allocation4 + $0x270] sm:$0xf] }
 0x3dc   :  { %2100 = vmatpush.bf16.msrb.mxu3 %v3103_v58  ;;  %v2975_v58 = vor.u32 %v3465_v51, %v2972_v52  ;;  %v3167_v2 = vor.u32 %v3517_v0, %v3166_v63  ;;  %v3490_v51 = vld [vmem:[#allocation4 + $0x1b0] sm:$0xf0]  ;;  %v3286_v52 = vld [vmem:[#allocation4 + $0x358] sm:$0xf] }
 0x3de   :  { %2088 = vmatpush.bf16.msrb.mxu2 %v2851_v6  ;;  %v2947_v6 = vor.u32 %v3458_v3, %v2944_v4  ;;  %v3034_v3 = vld [vmem:[#allocation4 + $0x160] sm:$0xf]  ;;  %v3483_v4 = vld [vmem:[#allocation4 + $0x178] sm:$0xf0] }
 0x3df   :  { %2127 = vmatpush.bf16.msra.mxu1 %v3079_v20 }
 0x3e0   :  { %2101 = vmatpush.bf16.msrb.mxu3 %v3075_v16  ;;  %v2916_v16 = vld [vmem:[#allocation4 + $0x94] sm:$0xf0] }
 0x3e2   :  { %2133 = vmatpush.bf16.msra.mxu2 %v3055_v45  ;;  %v2886_v45 = vld [vmem:[#allocation4 + $0x40] sm:$0xf] }
 0x3e4   :  { %2146 = vmatpush.bf16.msra.mxu3 %v3279_v54  ;;  %v3447_v54 = vld [vmem:[#allocation4 + $0x58] sm:$0xf0] }
 0x3e5   :  { %v2887_v13 = vor.u32 %v3447_v54, %v2886_v45  ;;  %v3532_v45 = vld [vmem:[#allocation4 + $0x300] sm:$0xf0]  ;;  %v3473_v54 = vld [vmem:[#allocation4 + $0x12c] sm:$0xf] }
 0x3e6   :  { %2134 = vmatpush.bf16.msra.mxu2 %v3027_v33  ;;  %v2858_v33 = vld [vmem:[#allocation4 + $0x8] sm:$0xf] }
 0x3e8   :  { %2147 = vmatpush.bf16.msra.mxu3 %v3251_v34  ;;  %v3440_v34 = vld [vmem:[#allocation4 + $0x20] sm:$0xf0] }
 0x3ec   :  { %2148 = vmatpush.bf16.msra.mxu3 %v3223_v25 }
 0x3f0   :  { %2149 = vmatpush.bf16.msra.mxu3 %v3195_v57 }
 0x3f4   :  { %2150 = vmatpush.bf16.msra.mxu3 %v3167_v2  ;;  %v3287_v2 = vor.u32 %v3546_v53, %v3286_v52 }
 0x3f8   :  { %2151 = vmatpush.bf16.msra.mxu3 %v3139_v17  ;;  %v3006_v17 = vld [vmem:[#allocation4 + $0x128] sm:$0xf] }
 0x451   :  { %v1280_v44 = vpop.f32.mrf.mxu3 }
 0x452   :  { %v1281_v49 = vadd.f32 %v3559_v31, %v1280_v44  ;;  %v3535_v31 = vld [vmem:[#allocation4 + $0x31c] sm:$0xf]  ;;  %v2999_v44 = vor.u32 %v3475_v36, %v2998_v35  ;;  %v2859_v35 = vor.u32 %v3440_v34, %v2858_v33  ;;  %v3496_v36 = vld [vmem:[#allocation4 + $0x1e0] sm:$0xf0]  ;;  %v3525_v33 = vld [vmem:[#allocation4 + $0x2c8] sm:$0xf0] }
 0x453   :  { %v3255_v38 = vor.u32 %v3535_v31, %v3252_v32  ;;  %v3112_v31 = vld [vmem:[#allocation4 + $0x21c] sm:$0xf0]  ;;  %v3466_v34 = vld [vmem:[#allocation4 + $0xf4] sm:$0xf] }
 0x454   :  { %3572 = vtanh.f32 %v1281_v49  ;;  %v3227_v49 = vor.u32 %v3528_v42, %v3224_v43  ;;  %2135 = vmatpush.bf16.msra.mxu2 %v2999_v44  ;;  %v3115_v32 = vor.u32 %v3500_v30, %v3112_v31  ;;  %v3084_v42 = vld [vmem:[#allocation4 + $0x1e4] sm:$0xf0]  ;;  %v1292_v44 = vld [vmem:[%s3984_s15] sm:$0x3] }
 0x455   :  { %v3087_v43 = vor.u32 %v3493_v41, %v3084_v42  ;;  %v1294_v25 = vperm.slane %v1292_v44, 0 }
 0x458   :  { %2136 = vmatpush.bf16.msra.mxu2 %v2971_v56 }
 0x459   :  { %v1282_v10 = vpop.f32.mrf.mxu3 }
 0x45a   :  { %v3573_v15 = vpop.eup %3572  ;;  %v3454_v10 = vld [vmem:[#allocation4 + $0x90] sm:$0xf0] }
 0x45b   :  { %v1285_v19 = vpack.c.bf16 %v3573_v15, %v3573_v15  ;;  %v2915_v12 = vor.u32 %v3454_v10, %v2914_v9  ;;  %v3451_v15 = vld [vmem:[#allocation4 + $0x7c] sm:$0xf]  ;;  %v3480_v10 = vld [vmem:[#allocation4 + $0x164] sm:$0xf] }
 0x45c   :  { %2137 = vmatpush.bf16.msra.mxu2 %v2943_v1  ;;  %v2919_v18 = vor.u32 %v3451_v15, %v2916_v16  ;;  %v3063_v1 = vor.u32 %v3490_v51, %v3062_v50  ;;  %v3539_v9 = vld [vmem:[#allocation4 + $0x338] sm:$0xf0]  ;;  %v3035_v15 = vor.u32 %v3483_v4, %v3034_v3  ;;  %v2922_v50 = vld [vmem:[#allocation4 + $0x80] sm:$0xf]  ;;  %v3151_v4 = vor.u32 %v3508_v59, %v3148_v61  ;;  %v3154_v59 = vld [vmem:[#allocation4 + $0x248] sm:$0xf] }
 0x45d   :  { %2846 = vmatmul.msk.bf16.vlgmr.msrb.gmra.mxu0 %vm1160_vm0, %v1285_v19  ;;  %2847 = vmatmul.msk.bf16.vlgmr.msrb.gmra.mxu1 %vm1160_vm0, %v1285_v19  ;;  %v3140_v19 = vld [vmem:[#allocation4 + $0x254] sm:$0xf0]  ;;  %v3455_v51 = vld [vmem:[#allocation4 + $0x98] sm:$0xf0]  ;;  %v3512_v61 = vld [vmem:[#allocation4 + $0x260] sm:$0xf0] }
 0x45e   :  { %2159 = vmatpush.bf16.msrb.mxu0 %v3059_v21  ;;  %2172 = vmatpush.bf16.msrb.mxu1 %v3283_v26  ;;  %v3143_v20 = vor.u32 %v3507_v60, %v3140_v19  ;;  %v3110_v21 = vld [vmem:[#allocation4 + $0x200] sm:$0xf]  ;;  %v3039_v60 = vor.u32 %v3480_v10, %v3036_v11  ;;  %v3501_v10 = vld [vmem:[#allocation4 + $0x20c] sm:$0xf]  ;;  %v3120_v11 = vld [vmem:[#allocation4 + $0x224] sm:$0xf0] }
 0x45f   :  { %v2888_v26 = vld [vmem:[#allocation4 + $0x5c] sm:$0xf0]  ;;  %v3111_v27 = vor.u32 %v3503_v22, %v3110_v21  ;;  %v3008_v21 = vld [vmem:[#allocation4 + $0x144] sm:$0xf0] }
 0x460   :  { %2138 = vmatpush.bf16.msra.mxu2 %v2915_v12  ;;  %v2891_v29 = vor.u32 %v3444_v24, %v2888_v26  ;;  %v3536_v12 = vld [vmem:[#allocation4 + $0x324] sm:$0xf]  ;;  %v3232_v22 = vld [vmem:[#allocation4 + $0x304] sm:$0xf0]  ;;  %v3011_v30 = vor.u32 %v3473_v54, %v3008_v21  ;;  %v3494_v54 = vld [vmem:[#allocation4 + $0x1d4] sm:$0xf] }
 0x461   :  { %2152 = vmatpush.bf16.msra.mxu3 %v3111_v27  ;;  %v3263_v19 = vor.u32 %v3536_v12, %v3260_v14  ;;  %v2978_v27 = vld [vmem:[#allocation4 + $0xf0] sm:$0xf] }
 0x462   :  { %2160 = vmatpush.bf16.msrb.mxu0 %v3031_v23  ;;  %2173 = vmatpush.bf16.msrb.mxu1 %v3255_v38  ;;  %v3082_v23 = vld [vmem:[#allocation4 + $0x1c8] sm:$0xf]  ;;  %v3092_v21 = vld [vmem:[#allocation4 + $0x1ec] sm:$0xf0] }
 0x463   :  { %v2860_v38 = vld [vmem:[#allocation4 + $0x24] sm:$0xf0]  ;;  %v3083_v39 = vor.u32 %v3496_v36, %v3082_v23  ;;  %v2980_v23 = vld [vmem:[#allocation4 + $0x10c] sm:$0xf0] }
 0x464   :  { %2139 = vmatpush.bf16.msra.mxu2 %v2887_v13  ;;  %v2863_v40 = vor.u32 %v3437_v37, %v2860_v38  ;;  %v3529_v13 = vld [vmem:[#allocation4 + $0x2ec] sm:$0xf]  ;;  %v3204_v36 = vld [vmem:[#allocation4 + $0x2cc] sm:$0xf0]  ;;  %v2983_v41 = vor.u32 %v3466_v34, %v2980_v23  ;;  %v3042_v34 = vld [vmem:[#allocation4 + $0x168] sm:$0xf] }
 0x465   :  { %2153 = vmatpush.bf16.msra.mxu3 %v3083_v39  ;;  %v3235_v31 = vor.u32 %v3529_v13, %v3232_v22  ;;  %v2950_v39 = vld [vmem:[#allocation4 + $0xb8] sm:$0xf]  ;;  %v3070_v13 = vld [vmem:[#allocation4 + $0x1a0] sm:$0xf]  ;;  %v3491_v22 = vld [vmem:[#allocation4 + $0x1b8] sm:$0xf0] }
 0x466   :  { %2161 = vmatpush.bf16.msrb.mxu0 %v3003_v28  ;;  %2174 = vmatpush.bf16.msrb.mxu1 %v3227_v49  ;;  %v1295_v28 = vperm.slane %v1292_v44, 1  ;;  %v3518_v44 = vld [vmem:[#allocation4 + $0x290] sm:$0xf0]  ;;  %v3484_v23 = vld [vmem:[#allocation4 + $0x180] sm:$0xf0] }
 0x468   :  { %2140 = vmatpush.bf16.msra.mxu2 %v2859_v35  ;;  %v3522_v35 = vld [vmem:[#allocation4 + $0x2b4] sm:$0xf] }
 0x469   :  { %v3207_v42 = vor.u32 %v3522_v35, %v3204_v36  ;;  %v3266_v35 = vld [vmem:[#allocation4 + $0x328] sm:$0xf]  ;;  %v3540_v36 = vld [vmem:[#allocation4 + $0x340] sm:$0xf0] }
 0x46a   :  { %2162 = vmatpush.bf16.msrb.mxu0 %v2975_v58  ;;  %2175 = vmatpush.bf16.msrb.mxu1 %v3199_v62  ;;  %v3064_v58 = vld [vmem:[#allocation4 + $0x1b4] sm:$0xf0] }
 0x46e   :  { %2163 = vmatpush.bf16.msrb.mxu0 %v2947_v6  ;;  %2176 = vmatpush.bf16.msrb.mxu1 %v3171_v8  ;;  %v3067_v6 = vor.u32 %v3487_v55, %v3064_v58  ;;  %v3258_v8 = vld [vmem:[#allocation4 + $0x320] sm:$0xf] }
 0x46f   :  { %v3259_v16 = vor.u32 %v3539_v9, %v3258_v8  ;;  %v3146_v55 = vld [vmem:[#allocation4 + $0x240] sm:$0xf]  ;;  %v3445_v8 = vld [vmem:[#allocation4 + $0x4c] sm:$0xf]  ;;  %v2896_v9 = vld [vmem:[#allocation4 + $0x64] sm:$0xf0] }
 0x470   :  { %v2924_v58 = vld [vmem:[#allocation4 + $0x9c] sm:$0xf0] }
 0x472   :  { %2164 = vmatpush.bf16.msrb.mxu0 %v2919_v18  ;;  %2177 = vmatpush.bf16.msrb.mxu1 %v3143_v20  ;;  %v3476_v18 = vld [vmem:[#allocation4 + $0x140] sm:$0xf0]  ;;  %v3230_v20 = vld [vmem:[#allocation4 + $0x2e8] sm:$0xf] }
 0x473   :  { %v3007_v24 = vor.u32 %v3476_v18, %v3006_v17  ;;  %v3231_v26 = vor.u32 %v3532_v45, %v3230_v20  ;;  %v3090_v17 = vld [vmem:[#allocation4 + $0x1d0] sm:$0xf]  ;;  %v2899_v18 = vor.u32 %v3445_v8, %v2896_v9  ;;  %v3438_v20 = vld [vmem:[#allocation4 + $0x14] sm:$0xf]  ;;  %v2874_v8 = vld [vmem:[#allocation4 + $0x18] sm:$0xf] }
 0x474   :  { %v2868_v45 = vld [vmem:[#allocation4 + $0x2c] sm:$0xf0]  ;;  %v3442_v9 = vld [vmem:[#allocation4 + $0x30] sm:$0xf0] }
 0x476   :  { %2165 = vmatpush.bf16.msrb.mxu0 %v2891_v29  ;;  %2178 = vmatpush.bf16.msrb.mxu1 %v3115_v32  ;;  %v3469_v29 = vld [vmem:[#allocation4 + $0x108] sm:$0xf0]  ;;  %v3202_v32 = vld [vmem:[#allocation4 + $0x2b0] sm:$0xf] }
 0x477   :  { %v2979_v37 = vor.u32 %v3469_v29, %v2978_v27  ;;  %v3203_v38 = vor.u32 %v3525_v33, %v3202_v32  ;;  %v3071_v32 = vor.u32 %v3491_v22, %v3070_v13 }
 0x47a   :  { %2166 = vmatpush.bf16.msrb.mxu0 %v2863_v40  ;;  %2179 = vmatpush.bf16.msrb.mxu1 %v3087_v43  ;;  %v3462_v40 = vld [vmem:[#allocation4 + $0xd0] sm:$0xf0]  ;;  %v3174_v43 = vld [vmem:[#allocation4 + $0x278] sm:$0xf] }
 0x4da   :  { %v1340_v46 = vpop.f32.mrf.mxu0  ;;  %v1353_v47 = vpop.f32.mrf.mxu1 }
 0x4db   :  { %v1341_v48 = vadd.f32 %v1340_v46, %v1294_v25  ;;  %v1354_v49 = vadd.f32 %v1353_v47, %v1295_v28  ;;  %v3459_v25 = vld [vmem:[#allocation4 + $0xbc] sm:$0xf]  ;;  %v2952_v28 = vld [vmem:[#allocation4 + $0xd4] sm:$0xf0] }
 0x4dc   :  { %v3515_v46 = vld [vmem:[#allocation4 + $0x27c] sm:$0xf]  ;;  %v3176_v47 = vld [vmem:[#allocation4 + $0x294] sm:$0xf0]  ;;  %v2955_v52 = vor.u32 %v3459_v25, %v2952_v28  ;;  %v3470_v28 = vld [vmem:[#allocation4 + $0x110] sm:$0xf0] }
 0x4dd   :  { %3574 = vtanh.f32 %v1341_v48  ;;  %v2951_v48 = vor.u32 %v3462_v40, %v2950_v39  ;;  %v3179_v53 = vor.u32 %v3515_v46, %v3176_v47  ;;  %v3014_v39 = vld [vmem:[#allocation4 + $0x130] sm:$0xf]  ;;  %v3477_v40 = vld [vmem:[#allocation4 + $0x148] sm:$0xf0]  ;;  %v2986_v25 = vld [vmem:[#allocation4 + $0xf8] sm:$0xf] }
 0x4de   :  { %3576 = vtanh.f32 %v1354_v49  ;;  %v3175_v49 = vor.u32 %v3518_v44, %v3174_v43  ;;  %v3015_v43 = vor.u32 %v3477_v40, %v3014_v39  ;;  %v3210_v46 = vld [vmem:[#allocation4 + $0x2b8] sm:$0xf]  ;;  %v3526_v47 = vld [vmem:[#allocation4 + $0x2d0] sm:$0xf0] }
 0x4e2   :  { %v1342_v56 = vpop.f32.mrf.mxu0  ;;  %v1355_v57 = vpop.f32.mrf.mxu1 }
 0x4e3   :  { %v3575_v62 = vpop.eup %3574  ;;  %v3511_v56 = vld [vmem:[#allocation4 + $0x258] sm:$0xf0]  ;;  %v3452_v57 = vld [vmem:[#allocation4 + $0x84] sm:$0xf] }
 0x4e4   :  { %v3577_v63 = vpop.eup %3576  ;;  %v3927_v0 = vpack.c.bf16 %v3575_v62, %v3575_v62  ;;  %v2923_v62 = vor.u32 %v3455_v51, %v2922_v50  ;;  %v2927_v3 = vor.u32 %v3452_v57, %v2924_v58  ;;  %v2958_v50 = vld [vmem:[#allocation4 + $0xc0] sm:$0xf]  ;;  %v3463_v51 = vld [vmem:[#allocation4 + $0xd8] sm:$0xf0]  ;;  %v2930_v57 = vld [vmem:[#allocation4 + $0x88] sm:$0xf] }
 0x4e5   :  { %v3929_v5 = vpack.c.bf16 %v3577_v63, %v3577_v63  ;;  %v3147_v63 = vor.u32 %v3511_v56, %v3146_v55  ;;  %v2959_v55 = vor.u32 %v3463_v51, %v2958_v50  ;;  %v3456_v58 = vld [vmem:[#allocation4 + $0xa0] sm:$0xf0] }
 0x4e6   :  { %2089 = vmatmul.bf16.vlgmr.msrb.gmra.mxu2 %v3927_v0  ;;  %2115 = vmatmul.bf16.vlgmr.msra.gmra.mxu0 %v3927_v0 }
 0x4e7   :  { %2102 = vmatmul.bf16.vlgmr.msrb.gmra.mxu3 %v3929_v5  ;;  %2128 = vmatmul.bf16.vlgmr.msra.gmra.mxu1 %v3929_v5 }
 0x4e8   :  { %2185 = vmatpush.bf16.msrb.mxu2 %v3063_v1  ;;  %2198 = vmatpush.bf16.msrb.mxu3 %v3287_v2  ;;  %v2894_v1 = vld [vmem:[#allocation4 + $0x48] sm:$0xf]  ;;  %v3448_v2 = vld [vmem:[#allocation4 + $0x60] sm:$0xf0] }
 0x4e9   :  { %2211 = vmatpush.bf16.msra.mxu0 %v3067_v6  ;;  %2224 = vmatpush.bf16.msra.mxu1 %v3291_v7  ;;  %v3118_v6 = vld [vmem:[#allocation4 + $0x208] sm:$0xf]  ;;  %v3504_v7 = vld [vmem:[#allocation4 + $0x220] sm:$0xf0]  ;;  %v2895_v12 = vor.u32 %v3448_v2, %v2894_v1  ;;  %v2902_v1 = vld [vmem:[#allocation4 + $0x50] sm:$0xf] }
 0x4ea   :  { %v3119_v14 = vor.u32 %v3504_v7, %v3118_v6  ;;  %v3449_v2 = vld [vmem:[#allocation4 + $0x68] sm:$0xf0] }
 0x4eb   :  { %v2903_v6 = vor.u32 %v3449_v2, %v2902_v1 }
 0x4ec   :  { %2186 = vmatpush.bf16.msrb.mxu2 %v3035_v15  ;;  %2199 = vmatpush.bf16.msrb.mxu3 %v3259_v16  ;;  %v2866_v15 = vld [vmem:[#allocation4 + $0x10] sm:$0xf]  ;;  %v3441_v16 = vld [vmem:[#allocation4 + $0x28] sm:$0xf0] }
 0x4ed   :  { %2212 = vmatpush.bf16.msra.mxu0 %v3039_v60  ;;  %2225 = vmatpush.bf16.msra.mxu1 %v3263_v19  ;;  %v3123_v60 = vor.u32 %v3501_v10, %v3120_v11  ;;  %v3497_v19 = vld [vmem:[#allocation4 + $0x1e8] sm:$0xf0]  ;;  %v2867_v27 = vor.u32 %v3441_v16, %v2866_v15  ;;  %v3098_v10 = vld [vmem:[#allocation4 + $0x1d8] sm:$0xf]  ;;  %v3498_v11 = vld [vmem:[#allocation4 + $0x1f0] sm:$0xf0] }
 0x4ee   :  { %v3091_v29 = vor.u32 %v3497_v19, %v3090_v17  ;;  %v1489_v15 = vld [vmem:[%s3986_s17] sm:$0xff] }
 0x4ef   :  { %v1492_v16 = vperm.slane %v1489_v15, 1  ;;  %v1494_v22 = vperm.slane %v1489_v15, 3  ;;  %v1496_v40 = vperm.slane %v1489_v15, 5 }
 0x4f0   :  { %2187 = vmatpush.bf16.msrb.mxu2 %v3007_v24  ;;  %2200 = vmatpush.bf16.msrb.mxu3 %v3231_v26  ;;  %v3294_v24 = vld [vmem:[#allocation4 + $0x360] sm:$0xf]  ;;  %v3547_v26 = vld [vmem:[#allocation4 + $0x378] sm:$0xf0] }
 0x4f1   :  { %2213 = vmatpush.bf16.msra.mxu0 %v3011_v30  ;;  %2226 = vmatpush.bf16.msra.mxu1 %v3235_v31  ;;  %v2871_v30 = vor.u32 %v3438_v20, %v2868_v45  ;;  %v3095_v31 = vor.u32 %v3494_v54, %v3092_v21  ;;  %v3295_v33 = vor.u32 %v3547_v26, %v3294_v24  ;;  %v1491_v20 = vperm.slane %v1489_v15, 0 }
 0x4f4   :  { %2188 = vmatpush.bf16.msrb.mxu2 %v2979_v37  ;;  %2201 = vmatpush.bf16.msrb.mxu3 %v3203_v38  ;;  %v3043_v37 = vor.u32 %v3484_v23, %v3042_v34  ;;  %v3267_v38 = vor.u32 %v3540_v36, %v3266_v35 }
 0x4f5   :  { %2214 = vmatpush.bf16.msra.mxu0 %v2983_v41  ;;  %2227 = vmatpush.bf16.msra.mxu1 %v3207_v42  ;;  %v3238_v41 = vld [vmem:[#allocation4 + $0x2f0] sm:$0xf]  ;;  %v3533_v42 = vld [vmem:[#allocation4 + $0x308] sm:$0xf0] }
 0x4f6   :  { %2141 = vmatmul.bf16.vlgmr.msra.gmra.mxu2 %v3927_v0  ;;  %2167 = vmatmul.bf16.vlgmr.msrb.gmra.mxu0 %v3927_v0  ;;  %v3239_v44 = vor.u32 %v3533_v42, %v3238_v41 }
 0x4f7   :  { %2154 = vmatmul.bf16.vlgmr.msra.gmra.mxu3 %v3929_v5  ;;  %2180 = vmatmul.bf16.vlgmr.msrb.gmra.mxu1 %v3929_v5 }
 0x4f8   :  { %2189 = vmatpush.bf16.msrb.mxu2 %v2951_v48  ;;  %2202 = vmatpush.bf16.msrb.mxu3 %v3175_v49  ;;  %v2987_v48 = vor.u32 %v3470_v28, %v2986_v25  ;;  %v3211_v49 = vor.u32 %v3526_v47, %v3210_v46 }
 0x4f9   :  { %2215 = vmatpush.bf16.msra.mxu0 %v2955_v52  ;;  %2228 = vmatpush.bf16.msra.mxu1 %v3179_v53  ;;  %v3182_v52 = vld [vmem:[#allocation4 + $0x280] sm:$0xf]  ;;  %v3519_v53 = vld [vmem:[#allocation4 + $0x298] sm:$0xf0] }
 0x4fa   :  { %v3183_v56 = vor.u32 %v3519_v53, %v3182_v52  ;;  %v1497_v53 = vperm.slane %v1489_v15, 6 }
 0x4fc   :  { %2190 = vmatpush.bf16.msrb.mxu2 %v2923_v62  ;;  %2203 = vmatpush.bf16.msrb.mxu3 %v3147_v63  ;;  %v2931_v62 = vor.u32 %v3456_v58, %v2930_v57  ;;  %v3155_v63 = vor.u32 %v3512_v61, %v3154_v59 }
 0x4fd   :  { %2216 = vmatpush.bf16.msra.mxu0 %v2927_v3  ;;  %2229 = vmatpush.bf16.msra.mxu1 %v3151_v4  ;;  %v3126_v3 = vld [vmem:[#allocation4 + $0x210] sm:$0xf]  ;;  %v3505_v4 = vld [vmem:[#allocation4 + $0x228] sm:$0xf0] }
 0x4fe   :  { %v3127_v7 = vor.u32 %v3505_v4, %v3126_v3 }
 0x500   :  { %2191 = vmatpush.bf16.msrb.mxu2 %v2895_v12  ;;  %2204 = vmatpush.bf16.msrb.mxu3 %v3119_v14  ;;  %v2875_v12 = vor.u32 %v3442_v9, %v2874_v8  ;;  %v3099_v14 = vor.u32 %v3498_v11, %v3098_v10 }
 0x501   :  { %2217 = vmatpush.bf16.msra.mxu0 %v2899_v18  ;;  %2230 = vmatpush.bf16.msra.mxu1 %v3123_v60 }
 0x504   :  { %2192 = vmatpush.bf16.msrb.mxu2 %v2867_v27  ;;  %2205 = vmatpush.bf16.msrb.mxu3 %v3091_v29 }
 0x505   :  { %2218 = vmatpush.bf16.msra.mxu0 %v2871_v30  ;;  %2231 = vmatpush.bf16.msra.mxu1 %v3095_v31 }
 0x507   :  { %2193 = vmatmul.bf16.vlgmr.msrb.gmra.mxu2 %v3927_v0  ;;  %2206 = vmatmul.bf16.vlgmr.msrb.gmra.mxu3 %v3929_v5 }
 0x508   :  { %2237 = vmatpush.bf16.msra.mxu2 %v3071_v32  ;;  %2250 = vmatpush.bf16.msra.mxu3 %v3295_v33  ;;  %v1493_v32 = vperm.slane %v1489_v15, 2 }
 0x509   :  { %2219 = vmatmul.bf16.vlgmr.msra.gmra.mxu0 %v3927_v0  ;;  %2232 = vmatmul.bf16.vlgmr.msra.gmra.mxu1 %v3929_v5 }
 0x50c   :  { %2238 = vmatpush.bf16.msra.mxu2 %v3043_v37  ;;  %2251 = vmatpush.bf16.msra.mxu3 %v3267_v38 }
 0x510   :  { %2239 = vmatpush.bf16.msra.mxu2 %v3015_v43  ;;  %2252 = vmatpush.bf16.msra.mxu3 %v3239_v44  ;;  %v1495_v44 = vperm.slane %v1489_v15, 4 }
 0x514   :  { %2240 = vmatpush.bf16.msra.mxu2 %v2987_v48  ;;  %2253 = vmatpush.bf16.msra.mxu3 %v3211_v49 }
 0x518   :  { %2241 = vmatpush.bf16.msra.mxu2 %v2959_v55  ;;  %2254 = vmatpush.bf16.msra.mxu3 %v3183_v56 }
 0x51c   :  { %2242 = vmatpush.bf16.msra.mxu2 %v2931_v62  ;;  %2255 = vmatpush.bf16.msra.mxu3 %v3155_v63 }
 0x520   :  { %2243 = vmatpush.bf16.msra.mxu2 %v2903_v6  ;;  %2256 = vmatpush.bf16.msra.mxu3 %v3127_v7 }
 0x524   :  { %2244 = vmatpush.bf16.msra.mxu2 %v2875_v12  ;;  %2257 = vmatpush.bf16.msra.mxu3 %v3099_v14 }
 0x527   :  { %2245 = vmatmul.bf16.vlgmr.msra.gmra.mxu2 %v3927_v0  ;;  %2258 = vmatmul.bf16.vlgmr.msra.gmra.mxu3 %v3929_v5 }
 0x563   :  { %v2116_v17 = vpop.f32.mrf.mxu0 }
 0x564   :  { %v2117_v18 = vadd.f32 %v2116_v17, %v1492_v16  ;;  %v2129_v60 = vpop.f32.mrf.mxu1 }
 0x566   :  { %v2130_v19 = vadd.f32 %v2129_v60, %v2117_v18 }
 0x568   :  { %2266 = vst [vmem:[%s3988_s19 + $0x8] sm:$0xff] %v2130_v19 }
 0x569   :  { %v2090_v45 = vpop.f32.mrf.mxu2 }
 0x56a   :  { %v2091_v54 = vadd.f32 %v2090_v45, %v1491_v20  ;;  %v2103_v21 = vpop.f32.mrf.mxu3 }
 0x56b   :  { %v2118_v0 = vpop.f32.mrf.mxu0 }
 0x56c   :  { %v2104_v13 = vadd.f32 %v2103_v21, %v2091_v54  ;;  %v2131_v5 = vpop.f32.mrf.mxu1 }
 0x56e   :  { %2265 = vst [vmem:[%s3988_s19] sm:$0xff] %v2104_v13 }
 0x571   :  { %v2092_v24 = vpop.f32.mrf.mxu2 }
 0x572   :  { %v2105_v26 = vpop.f32.mrf.mxu3 }
 0x573   :  { %v2168_v27 = vpop.f32.mrf.mxu0 }
 0x574   :  { %v2169_v29 = vadd.f32 %v2168_v27, %v1494_v22  ;;  %v2181_v30 = vpop.f32.mrf.mxu1 }
 0x576   :  { %v2182_v31 = vadd.f32 %v2181_v30, %v2169_v29 }
 0x578   :  { %2268 = vst [vmem:[%s3988_s19 + $0x18] sm:$0xff] %v2182_v31 }
 0x579   :  { %v2142_v33 = vpop.f32.mrf.mxu2 }
 0x57a   :  { %v2143_v34 = vadd.f32 %v2142_v33, %v1493_v32  ;;  %v2155_v23 = vpop.f32.mrf.mxu3 }
 0x57b   :  { %v2170_v35 = vpop.f32.mrf.mxu0 }
 0x57c   :  { %v2156_v36 = vadd.f32 %v2155_v23, %v2143_v34  ;;  %v2183_v37 = vpop.f32.mrf.mxu1 }
 0x57e   :  { %2267 = vst [vmem:[%s3988_s19 + $0x10] sm:$0xff] %v2156_v36 }
 0x581   :  { %v2144_v38 = vpop.f32.mrf.mxu2 }
 0x582   :  { %v2157_v39 = vpop.f32.mrf.mxu3 }
 0x586   :  { %v2220_v41 = vpop.f32.mrf.mxu0  ;;  %v2233_v42 = vpop.f32.mrf.mxu1 }
 0x587   :  { %v2221_v43 = vadd.f32 %v2220_v41, %v1496_v40 }
 0x589   :  { %v2234_v25 = vadd.f32 %v2233_v42, %v2221_v43 }
 0x58a   :  { %v2194_v28 = vpop.f32.mrf.mxu2  ;;  %v2207_v46 = vpop.f32.mrf.mxu3 }
 0x58b   :  { %2270 = vst [vmem:[%s3988_s19 + $0x28] sm:$0xff] %v2234_v25  ;;  %v2195_v47 = vadd.f32 %v2194_v28, %v1495_v44 }
 0x58d   :  { %v2208_v48 = vadd.f32 %v2207_v46, %v2195_v47 }
 0x58e   :  { %v2222_v49 = vpop.f32.mrf.mxu0  ;;  %v2235_v50 = vpop.f32.mrf.mxu1 }
 0x58f   :  { %2269 = vst [vmem:[%s3988_s19 + $0x20] sm:$0xff] %v2208_v48 }
 0x592   :  { %v2196_v51 = vpop.f32.mrf.mxu2  ;;  %v2209_v52 = vpop.f32.mrf.mxu3 }
 0x5aa   :  { %v2246_v55 = vpop.f32.mrf.mxu2  ;;  %v2259_v56 = vpop.f32.mrf.mxu3 }
 0x5ab   :  { %v2247_v57 = vadd.f32 %v2246_v55, %v1497_v53 }
 0x5ad   :  { %v2260_v58 = vadd.f32 %v2259_v56, %v2247_v57 }
 0x5af   :  { %2271 = vst [vmem:[%s3988_s19 + $0x30] sm:$0xff] %v2260_v58 }
 0x5b2   :  { %v2248_v59 = vpop.f32.mrf.mxu2  ;;  %v2261_v61 = vpop.f32.mrf.mxu3 }
 0x5b3   :  { %2280 = vsyncpa [#allocation3], 1 }
 0x5b4   :  { %2281 = vsyncpa [#allocation5], 1 }

</bundles_post_ra>
